<compile_context>
chip_gen: v6e
topology: v6e:2x2x1
jax: 0.10.0
libtpu: 0.0.40
codegen_flags: <defaults>
</compile_context>

<pallas_src>
import jax
import jax.numpy as jnp
from jax.experimental import pallas as pl
from jax.experimental.pallas import tpu as pltpu


# ----------------------------- fused Pallas kernel ------------------------------

def _fused_forward_kernel(patches_ref, wc_ref, bc_ref, wf_ref, bf_ref,
                          out_ref, acc_ref):
    """One grid step: conv(2x2)+sigmoid for a (tp patches, bm images) tile, then the
    partial FC contraction over this patch chunk, accumulated into f32 scratch.

    patches_ref: (tp, bm, 4)  f32   4 conv taps per patch, image dim on sublanes
    wc_ref:      (4, C)       f32   conv weight (tap-major)
    bc_ref:      (1, C)       f32   conv bias
    wf_ref:      (tp, C, E)   bf16  FC weight chunk (channel-major flatten folded in)
    bf_ref:      (1, E)       f32   FC bias
    out_ref:     (bm, E)      f32   embeddings (written on last reduction step)
    acc_ref:     (bm, E)      f32   VMEM accumulator
    """
    k = pl.program_id(1)

    @pl.when(k == 0)
    def _init():
        acc_ref[...] = jnp.zeros_like(acc_ref)

    p = patches_ref[...]                                   # (tp, bm, 4)
    tp, bm, _ = p.shape

    # Conv2d(1, C, kernel_size=2) as ONE MXU matmul over the 4 taps (no XLU
    # lane broadcasts).  bm is a multiple of 8, so the leading-dim merge/split
    # reshapes are layout no-ops.
    z = jnp.dot(p.reshape(tp * bm, 4), wc_ref[...],
                preferred_element_type=jnp.float32)        # (tp*bm, C)
    z = z + bc_ref[...]                                    # sublane-broadcast bias
    # Sigmoid: EUP exp + approximate EUP reciprocal (stays f32).
    act = pl.reciprocal(1.0 + jnp.exp(-z), approx=True)    # (tp*bm, C)
    act = act.reshape(tp, bm, -1).astype(jnp.bfloat16)     # (tp, bm, C)

    # Partial FC for this patch chunk: one batched MXU dot (K = C per patch),
    # then a cheap VPU reduction over the patch-batch axis.
    part = jnp.einsum('tbc,tce->tbe', act, wf_ref[...],
                      preferred_element_type=jnp.float32)  # (tp, bm, E)
    acc_ref[...] += jnp.sum(part, axis=0)

    @pl.when(k == pl.num_programs(1) - 1)
    def _finalize():
        y = acc_ref[...] + bf_ref[...]
        # nn.LeakyReLU(2): x if x >= 0 else 2 * x
        out_ref[...] = jnp.where(y >= 0.0, y, 2.0 * y)


def fused_forward(patches, wc, bc, wf3, bf, *, bm, tp):
    P_pad, n_pad, _ = patches.shape
    C = wc.shape[1]
    E = wf3.shape[-1]
    grid = (n_pad // bm, P_pad // tp)

    # VMEM budget (double-buffered inputs/outputs + accumulator), capped for v7x.
    wf_blk = tp * C * E * 2
    patch_blk = tp * bm * 4 * 4
    out_blk = bm * E * 4
    need = 2 * (wf_blk + patch_blk + out_blk) + bm * E * 4 + (4 * C + C + E) * 4
    vmem_limit = int(min(48 * 1024 * 1024, max(16 * 1024 * 1024, 2 * need)))

    return pl.pallas_call(
        _fused_forward_kernel,
        out_shape=jax.ShapeDtypeStruct((n_pad, E), jnp.float32),
        grid_spec=pltpu.PrefetchScalarGridSpec(
            num_scalar_prefetch=0,
            grid=grid,
            in_specs=[
                pl.BlockSpec((tp, bm, 4), lambda i, k: (k, i, 0)),   # patches
                pl.BlockSpec((4, C), lambda i, k: (0, 0)),           # conv W
                pl.BlockSpec((1, C), lambda i, k: (0, 0)),           # conv b
                pl.BlockSpec((tp, C, E), lambda i, k: (k, 0, 0)),    # FC W chunk
                pl.BlockSpec((1, E), lambda i, k: (0, 0)),           # FC b
            ],
            out_specs=pl.BlockSpec((bm, E), lambda i, k: (i, 0)),
            scratch_shapes=[pltpu.VMEM((bm, E), jnp.float32)],
        ),
        compiler_params=pltpu.CompilerParams(
            dimension_semantics=("parallel", "arbitrary"),
            vmem_limit_bytes=vmem_limit,
        ),
    )(patches, wc, bc, wf3, bf)


# ------------------------------- model glue --------------------------------

def _round_up(x, m):
    return ((x + m - 1) // m) * m


def _im2col_2x2(x):
    """(N, 1, H, W) -> (P, N, 4): the 4 conv taps per 2x2 patch; tap order matches
    conv_weight.reshape(C, 4) row-major over (kh, kw).  The stack/reshape/transpose
    fuse into the single XLA write that materializes the patch tensor."""
    n, _, h, w = x.shape
    x0 = x[:, 0]
    taps = jnp.stack(
        [x0[:, :-1, :-1], x0[:, :-1, 1:], x0[:, 1:, :-1], x0[:, 1:, 1:]],
        axis=-1,
    )                                                   # (N, Ho, Wo, 4)
    return taps.reshape(n, (h - 1) * (w - 1), 4).transpose(1, 0, 2)   # (P, N, 4)


class ShotSiamesePallas:
    """JAX/Pallas port of shotSiameseNetwork (single fused TPU kernel per forward)."""

    CONV_OUT = 256

    def __init__(self, embedding_dim, in_hw, key):
        H, W = in_hw
        self.Ho, self.Wo = H - 1, W - 1
        self.P = self.Ho * self.Wo
        self.C = self.CONV_OUT
        self.F = self.C * self.P                 # LazyLinear in_features
        self.E = embedding_dim

        # FC reduction chunk: largest patch chunk whose bf16 weight block stays
        # under ~3 MiB (so 2x buffering fits comfortably inside v7x's 64 MiB VMEM),
        # capped at 256 patches per chunk.  P is zero-padded to a multiple of tp.
        budget_bytes = 3 * 1024 * 1024
        self.tp = max(1, min(self.P, 256, budget_bytes // (self.C * self.E * 2)))
        self.P_pad = _round_up(self.P, self.tp)

        k1, k2, k3, k4 = jax.random.split(key, 4)
        # Conv2d(1, 256, kernel_size=2): weight (256, 1, 2, 2), bias (256,)
        cb = 1.0 / (1 * 2 * 2) ** 0.5
        conv_w = jax.random.uniform(k1, (self.C, 1, 2, 2), jnp.float32, -cb, cb)
        conv_b = jax.random.uniform(k2, (self.C,), jnp.float32, -cb, cb)
        # LazyLinear(E): weight (E, F), bias (E,)
        fb = 1.0 / self.F ** 0.5
        fc_w = jax.random.uniform(k3, (self.E, self.F), jnp.float32, -fb, fb)
        fc_b = jax.random.uniform(k4, (self.E,), jnp.float32, -fb, fb)

        # Conv weight in tap-major matmul form.
        self.wc = conv_w.reshape(self.C, 4).T                    # (4, C) f32
        self.bc = conv_b.reshape(1, self.C)                      # (1, C) f32

        # Fold torch's channel-major flatten (f = c*P + p) into the FC weight so the
        # kernel contracts directly over (patch, channel): wf3[p, c, e] = W.T[c*P+p, e]
        wf3 = fc_w.T.reshape(self.C, self.P, self.E).transpose(1, 0, 2)   # (P, C, E)
        # Zero-pad the patch axis only (padded patches contribute exactly 0);
        # NO E-axis padding -> the dominant HBM weight stream carries real bytes only.
        wf3 = jnp.pad(wf3, ((0, self.P_pad - self.P), (0, 0), (0, 0)))
        self.wf3 = wf3.astype(jnp.bfloat16)                      # (P_pad, C, E) bf16
        self.bf = fc_b.reshape(1, self.E)                        # (1, E) f32

    def forward_once(self, x):
        # x: (N, 1, H, W)
        n = x.shape[0]
        n8 = _round_up(n, 8)
        # Batch tile: as large as the batch allows (amortizes the FC-weight stream
        # over many MXU LHS rows); single tile / grid=(1,1) at demo scale.
        # TODO(synk): on v7x with large batches pick bm = n_pad // 2 so the
        # "parallel" grid axis has extent >= 2 and both TensorCores are used.
        bm = n8 if n8 <= 256 else 256
        n_pad = _round_up(n, bm)

        patches = _im2col_2x2(x)                                 # (P, N, 4)
        patches = jnp.pad(
            patches, ((0, self.P_pad - self.P), (0, n_pad - n), (0, 0)))
        out = fused_forward(patches, self.wc, self.bc, self.wf3, self.bf,
                            bm=bm, tp=self.tp)                   # (n_pad, E)
        return out[:n]

    def __call__(self, x1, x2, x3):
        # Shared weights: one fused pass over the stacked triplet, then split.
        b = x1.shape[0]
        out = self.forward_once(jnp.concatenate([x1, x2, x3], axis=0))
        return out[:b], out[b:2 * b], out[2 * b:]


# --------------------------------- main -------------------------------------

if __name__ == "__main__":
    key = jax.random.PRNGKey(0)
    k_model, k1, k2, k3 = jax.random.split(key, 4)

    batch, H, W = 2, 5, 5          # conv out 4x4 -> F = 256*16 = 4096
    embedding_dim = 32

    model = ShotSiamesePallas(embedding_dim, (H, W), k_model)

    x1 = jax.random.normal(k1, (batch, 1, H, W), jnp.float32)
    x2 = jax.random.normal(k2, (batch, 1, H, W), jnp.float32)
    x3 = jax.random.normal(k3, (batch, 1, H, W), jnp.float32)

    o1, o2, o3 = model(x1, x2, x3)
    jax.block_until_ready((o1, o2, o3))

    assert o1.shape == (batch, embedding_dim)
    assert o2.shape == (batch, embedding_dim)
    assert o3.shape == (batch, embedding_dim)
    assert bool(jnp.all(jnp.isfinite(o1)) & jnp.all(jnp.isfinite(o2))
                & jnp.all(jnp.isfinite(o3)))
    print("KERNEL_OK")
</pallas_src>

<mosaic_0001>
module attributes {stable_mosaic.version = 11 : i64} {
  func.func @_fused_forward_kernel(%arg0: i32, %arg1: i32, %arg2: memref<16x8x4xf32, #tpu.memory_space<vmem>>, %arg3: memref<4x256xf32, #tpu.memory_space<vmem>>, %arg4: memref<1x256xf32, #tpu.memory_space<vmem>>, %arg5: memref<16x256x32xbf16, #tpu.memory_space<vmem>>, %arg6: memref<1x32xf32, #tpu.memory_space<vmem>>, %arg7: memref<8x32xf32, #tpu.memory_space<vmem>>, %arg8: memref<8x32xf32, #tpu.memory_space<vmem>>) attributes {dimension_semantics = [#tpu.dimension_semantics<parallel>, #tpu.dimension_semantics<arbitrary>], iteration_bounds = array<i64: 1, 1>, scalar_prefetch = 0 : i64, scratch_operands = 1 : i64, tpu.core_type = #tpu.core_type<tc>, window_params = [{transform_indices = @transform_0, window_bounds = array<i64: 16, 8, 4>}, {pipeline_mode = #tpu.pipeline_mode<synchronous>, transform_indices = @transform_1, window_bounds = array<i64: 4, 256>}, {pipeline_mode = #tpu.pipeline_mode<synchronous>, transform_indices = @transform_2, window_bounds = array<i64: 1, 256>}, {transform_indices = @transform_3, window_bounds = array<i64: 16, 256, 32>}, {pipeline_mode = #tpu.pipeline_mode<synchronous>, transform_indices = @transform_4, window_bounds = array<i64: 1, 32>}, {transform_indices = @transform_5, window_bounds = array<i64: 8, 32>}]} {
    %c0_i32 = arith.constant 0 : i32
    %0 = arith.cmpi eq, %arg1, %c0_i32 : i32
    %1 = arith.extui %0 : i1 to i32
    %c0_i32_0 = arith.constant 0 : i32
    %2 = arith.cmpi ne, %1, %c0_i32_0 : i32
    scf.if %2 {
      %cst_20 = arith.constant 0.000000e+00 : f32
      %27 = vector.broadcast %cst_20 : f32 to vector<8x32xf32>
      %c0_21 = arith.constant 0 : index
      %c0_22 = arith.constant 0 : index
      %28 = vector.load %arg8[%c0_21, %c0_22] : memref<8x32xf32, #tpu.memory_space<vmem>>, vector<8x32xf32>
      tpu.vector_store %arg8[%c0_21, %c0_22], %27 {strides = array<i32>} : memref<8x32xf32, #tpu.memory_space<vmem>>, vector<8x32xf32>,
    } else {
    }
    %c0 = arith.constant 0 : index
    %c0_1 = arith.constant 0 : index
    %c0_2 = arith.constant 0 : index
    %3 = vector.load %arg2[%c0, %c0_1, %c0_2] : memref<16x8x4xf32, #tpu.memory_space<vmem>>, vector<16x8x4xf32>
    %4 = vector.shape_cast %3 : vector<16x8x4xf32> to vector<128x4xf32>
    %c0_3 = arith.constant 0 : index
    %c0_4 = arith.constant 0 : index
    %5 = vector.load %arg3[%c0_3, %c0_4] : memref<4x256xf32, #tpu.memory_space<vmem>>, vector<4x256xf32>
    %cst = arith.constant dense<0.000000e+00> : vector<128x256xf32>
    %6 = tpu.matmul %4, %5, %cst {dimension_numbers = #tpu.dot_dimension_numbers<[1], [0], [0], [1], [0, 0, 1, 1], [], []>} : vector<128x4xf32>, vector<4x256xf32>, vector<128x256xf32> -> vector<128x256xf32>
    %c0_5 = arith.constant 0 : index
    %c0_6 = arith.constant 0 : index
    %7 = vector.load %arg4[%c0_5, %c0_6] : memref<1x256xf32, #tpu.memory_space<vmem>>, vector<1x256xf32>
    %8 = vector.broadcast %7 : vector<1x256xf32> to vector<128x256xf32>
    %9 = arith.addf %6, %8 : vector<128x256xf32>
    %cst_7 = arith.constant 0.000000e+00 : f32
    %10 = vector.broadcast %cst_7 : f32 to vector<128x256xf32>
    %11 = arith.subf %10, %9 : vector<128x256xf32>
    %12 = math.exp %11 : vector<128x256xf32>
    %cst_8 = arith.constant 1.000000e+00 : f32
    %13 = vector.broadcast %cst_8 : f32 to vector<128x256xf32>
    %14 = arith.addf %13, %12 : vector<128x256xf32>
    %15 = tpu.reciprocal %14 {approx = true} : vector<128x256xf32> -> vector<128x256xf32>
    %16 = vector.shape_cast %15 : vector<128x256xf32> to vector<16x8x256xf32>
    %17 = arith.truncf %16 : vector<16x8x256xf32> to vector<16x8x256xbf16>
    %c0_9 = arith.constant 0 : index
    %c0_10 = arith.constant 0 : index
    %c0_11 = arith.constant 0 : index
    %18 = vector.load %arg5[%c0_9, %c0_10, %c0_11] : memref<16x256x32xbf16, #tpu.memory_space<vmem>>, vector<16x256x32xbf16>
    "tpu.trace_start"() <{level = 10 : i32, message = "tbc,tce->tbe"}> : () -> ()
    %cst_12 = arith.constant dense<0.000000e+00> : vector<16x8x32xf32>
    %19 = tpu.matmul %17, %18, %cst_12 {dimension_numbers = #tpu.dot_dimension_numbers<[2], [1], [1], [2], [0, 0, 0, 1, 1, 2], [0], [0]>} : vector<16x8x256xbf16>, vector<16x256x32xbf16>, vector<16x8x32xf32> -> vector<16x8x32xf32>
    "tpu.trace_stop"() : () -> ()
    %c0_13 = arith.constant 0 : index
    %c0_14 = arith.constant 0 : index
    %20 = vector.load %arg8[%c0_13, %c0_14] : memref<8x32xf32, #tpu.memory_space<vmem>>, vector<8x32xf32>
    %cst_15 = arith.constant dense<0.000000e+00> : vector<8x32xf32>
    %21 = vector.multi_reduction <add>, %19, %cst_15 [0] : vector<16x8x32xf32> to vector<8x32xf32>
    %22 = arith.addf %20, %21 : vector<8x32xf32>
    %c0_16 = arith.constant 0 : index
    %c0_17 = arith.constant 0 : index
    %23 = vector.load %arg8[%c0_16, %c0_17] : memref<8x32xf32, #tpu.memory_space<vmem>>, vector<8x32xf32>
    tpu.vector_store %arg8[%c0_16, %c0_17], %22 {strides = array<i32>} : memref<8x32xf32, #tpu.memory_space<vmem>>, vector<8x32xf32>,
    %c0_i32_18 = arith.constant 0 : i32
    %24 = arith.cmpi eq, %arg1, %c0_i32_18 : i32
    %25 = arith.extui %24 : i1 to i32
    %c0_i32_19 = arith.constant 0 : i32
    %26 = arith.cmpi ne, %25, %c0_i32_19 : i32
    scf.if %26 {
      %c0_20 = arith.constant 0 : index
      %c0_21 = arith.constant 0 : index
      %27 = vector.load %arg8[%c0_20, %c0_21] : memref<8x32xf32, #tpu.memory_space<vmem>>, vector<8x32xf32>
      %c0_22 = arith.constant 0 : index
      %c0_23 = arith.constant 0 : index
      %28 = vector.load %arg6[%c0_22, %c0_23] : memref<1x32xf32, #tpu.memory_space<vmem>>, vector<1x32xf32>
      %29 = vector.broadcast %28 : vector<1x32xf32> to vector<8x32xf32>
      %30 = arith.addf %27, %29 : vector<8x32xf32>
      %cst_24 = arith.constant 0.000000e+00 : f32
      %31 = vector.broadcast %cst_24 : f32 to vector<8x32xf32>
      %32 = arith.cmpf oge, %30, %31 : vector<8x32xf32>
      %cst_25 = arith.constant 2.000000e+00 : f32
      %33 = vector.broadcast %cst_25 : f32 to vector<8x32xf32>
      %34 = arith.mulf %33, %30 : vector<8x32xf32>
      %35 = arith.select %32, %30, %34 : vector<8x32xi1>, vector<8x32xf32>
      %c0_26 = arith.constant 0 : index
      %c0_27 = arith.constant 0 : index
      %36 = vector.load %arg7[%c0_26, %c0_27] : memref<8x32xf32, #tpu.memory_space<vmem>>, vector<8x32xf32>
      tpu.vector_store %arg7[%c0_26, %c0_27], %35 {strides = array<i32>} : memref<8x32xf32, #tpu.memory_space<vmem>>, vector<8x32xf32>,
    } else {
    }
    return
  }
  func.func @transform_0(%arg0: i32, %arg1: i32) -> (i32, i32, i32) {
    %c0_i32 = arith.constant 0 : i32
    %c0_i32_0 = arith.constant 0 : i32
    return %arg1, %arg0, %c0_i32 : i32, i32, i32
  }
  func.func @transform_1(%arg0: i32, %arg1: i32) -> (i32, i32) {
    %c0_i32 = arith.constant 0 : i32
    %c0_i32_0 = arith.constant 0 : i32
    %c0_i32_1 = arith.constant 0 : i32
    return %c0_i32, %c0_i32_0 : i32, i32
  }
  func.func @transform_2(%arg0: i32, %arg1: i32) -> (i32, i32) {
    %c0_i32 = arith.constant 0 : i32
    %c0_i32_0 = arith.constant 0 : i32
    %c0_i32_1 = arith.constant 0 : i32
    return %c0_i32, %c0_i32_0 : i32, i32
  }
  func.func @transform_3(%arg0: i32, %arg1: i32) -> (i32, i32, i32) {
    %c0_i32 = arith.constant 0 : i32
    %c0_i32_0 = arith.constant 0 : i32
    %c0_i32_1 = arith.constant 0 : i32
    return %arg1, %c0_i32, %c0_i32_0 : i32, i32, i32
  }
  func.func @transform_4(%arg0: i32, %arg1: i32) -> (i32, i32) {
    %c0_i32 = arith.constant 0 : i32
    %c0_i32_0 = arith.constant 0 : i32
    %c0_i32_1 = arith.constant 0 : i32
    return %c0_i32, %c0_i32_0 : i32, i32
  }
  func.func @transform_5(%arg0: i32, %arg1: i32) -> (i32, i32) {
    %c0_i32 = arith.constant 0 : i32
    %c0_i32_0 = arith.constant 0 : i32
    return %arg0, %c0_i32 : i32, i32
  }
}

</mosaic_0001>

<bundles_post_ra>
// kernel: tpu_custom_call.1
= control target key start
LH: loop header
LB: loop body
LE: loop exit
PB: predicated region body
PF: predicated region fallthrough
CT: control target
= control target key end

     0   :  { %vm108_vm0 = vcmask 1043456   ;;  %v4255_v2 = vmov 0.0   ;;  %vm59_vm1 = vcmask 31744   ;;  %v47_v53 = vlaneseq  ;;  %s5257_s0 = inlined_call_operand.vmem [shape: f32[16,8,4], index: 0, kind: input, shape index: {}]   ;;  %s5258_s1 = inlined_call_operand.vmem [shape: f32[4,256], index: 1, kind: input, shape index: {}]   ;;  %s5259_s2 = inlined_call_operand.vmem [shape: f32[1,256], index: 2, kind: input, shape index: {}]   ;;  %s5260_s3 = inlined_call_operand.vmem [shape: bf16[16,256,32], index: 3, kind: input, shape index: {}]   ;;  %s5261_s4 = inlined_call_operand.vmem [shape: f32[1,32], index: 4, kind: input, shape index: {}]   ;;  %s5262_s5 = inlined_call_operand.hbm [shape: f32[8,32], index: 5, kind: output, shape index: {}]  }
   0x1   :  { %v44_v0 = vld [vmem:[%s5258_s1] sm:$0xff]  ;;  %177 = vmatprep.mubr.f32.mxu0 %v4255_v2  ;;  %v29_v4 = vld [vmem:[%s5257_s0 + $0x8] sm:$0xff]  ;;  %v30_v5 = vld [vmem:[%s5257_s0 + $0x10] sm:$0xff] }
   0x2   :  { %v58_v1 = vcombine.high %v44_v0, %v44_v0  ;;  %v28_v3 = vld [vmem:[%s5257_s0] sm:$0xff]  ;;  %v31_v6 = vld [vmem:[%s5257_s0 + $0x18] sm:$0xff]  ;;  %v33_v8 = vld [vmem:[%s5257_s0 + $0x28] sm:$0xff]  ;;  %v48_v54 = vshrl.u32 %v47_v53, 7 }
   0x3   :  { %v32_v7 = vld [vmem:[%s5257_s0 + $0x20] sm:$0xff]  ;;  %v34_v9 = vld [vmem:[%s5257_s0 + $0x30] sm:$0xff]  ;;  %v35_v10 = vld [vmem:[%s5257_s0 + $0x38] sm:$0xff] }
   0x4   :  { %3219 = vmatprep.subr.msk.mxu0 %vm108_vm0, %v58_v1  ;;  %v36_v11 = vld [vmem:[%s5257_s0 + $0x40] sm:$0xff]  ;;  %v37_v12 = vld [vmem:[%s5257_s0 + $0x48] sm:$0xff]  ;;  %v38_v13 = vld [vmem:[%s5257_s0 + $0x50] sm:$0xff]  ;;  %v49_v55 = vsub.s32 0, %v48_v54  ;;  %v53_v57 = vsub.s32 1, %v48_v54 }
   0x5   :  { %3220 = vmatpush1.msk.msra.mxu0 %vm108_vm0, %v44_v0  ;;  %v39_v14 = vld [vmem:[%s5257_s0 + $0x58] sm:$0xff]  ;;  %v40_v15 = vld [vmem:[%s5257_s0 + $0x60] sm:$0xff]  ;;  %v3851_v18 = vld [vmem:[%s5260_s3 + $0x70] sm:$0xff]  }
   0x6   :  { %3221 = vmatmul.mubr.msk.f32.vlgmr.msra.gmra.mxu0 %vm59_vm1, %v28_v3  ;;  %v3849_v16 = vld [vmem:[%s5260_s3 + $0x78] sm:$0xff]   ;;  %v3852_v19 = vld [vmem:[%s5260_s3 + $0x30] sm:$0xff]   ;;  %v3853_v20 = vld [vmem:[%s5260_s3 + $0x68] sm:$0xff]  }
   0x7   :  { %183 = vmatprep.mubr.f32.mxu0 %v4255_v2  ;;  %v3850_v17 = vld [vmem:[%s5260_s3 + $0x38] sm:$0xff]   ;;  %3494 = vmatprep.subr.bf16.mxu1 %v3849_v16  ;;  %v3854_v21 = vld [vmem:[%s5260_s3 + $0x28] sm:$0xff]   ;;  %v3855_v22 = vld [vmem:[%s5260_s3 + $0x60] sm:$0xff]  }
   0x8   :  { %3495 = vmatpush3.bf16.msra.mxu1 %v3850_v17  ;;  %v3856_v23 = vld [vmem:[%s5260_s3 + $0x20] sm:$0xff]   ;;  %v3857_v24 = vld [vmem:[%s5260_s3 + $0x58] sm:$0xff]   ;;  %v41_v26 = vld [vmem:[%s5257_s0 + $0x68] sm:$0xff] }
   0x9   :  { %3496 = vmatprep.subr.bf16.mxu1 %v3851_v18  ;;  %v3858_v25 = vld [vmem:[%s5260_s3 + $0x18] sm:$0xff]   ;;  %v3859_v27 = vld [vmem:[%s5260_s3 + $0x50] sm:$0xff]   ;;  %v3861_v29 = vld [vmem:[%s5260_s3 + $0x48] sm:$0xff]  }
   0xa   :  { %3222 = vmatmul.mubr.msk.f32.gmra.mxu0 %vm59_vm1, %v29_v4  ;;  %v3860_v28 = vld [vmem:[%s5260_s3 + $0x10] sm:$0xff]   ;;  %v3862_v31 = vld [vmem:[%s5260_s3 + $0x8] sm:$0xff]   ;;  %v3863_v32 = vld [vmem:[%s5260_s3 + $0x40] sm:$0xff]  }
   0xb   :  { %189 = vmatprep.mubr.f32.mxu0 %v4255_v2  ;;  %v42_v30 = vld [vmem:[%s5257_s0 + $0x70] sm:$0xff]  ;;  %v3864_v33 = vld [vmem:[%s5260_s3] sm:$0xff]   ;;  %v3867_v34 = vld [vmem:[%s5260_s3 + $0xf8] sm:$0xff]  }
   0xc   :  { %3497 = vmatpush3.bf16.msra.mxu1 %v3852_v19  ;;  %v3865_v35 = vld [vmem:[%s5260_s3 + $0x178] sm:$0xff]   ;;  %v3871_v37 = vld [vmem:[%s5260_s3 + $0x170] sm:$0xff]   ;;  %v3875_v39 = vld [vmem:[%s5260_s3 + $0x168] sm:$0xff]  }
   0xd   :  { %3498 = vmatprep.subr.bf16.mxu1 %v3853_v20  ;;  %v3866_v36 = vld [vmem:[%s5260_s3 + $0x138] sm:$0xff]   ;;  %3538 = vmatprep.subr.bf16.mxu0 %v3865_v35  ;;  %v3872_v38 = vld [vmem:[%s5260_s3 + $0x130] sm:$0xff]   ;;  %v3876_v40 = vld [vmem:[%s5260_s3 + $0x128] sm:$0xff]  }
   0xe   :  { %3223 = vmatmul.mubr.msk.f32.gmra.mxu0 %vm59_vm1, %v30_v5  ;;  %v3879_v41 = vld [vmem:[%s5260_s3 + $0x160] sm:$0xff]   ;;  %v3883_v43 = vld [vmem:[%s5260_s3 + $0x158] sm:$0xff]   ;;  %v3887_v46 = vld [vmem:[%s5260_s3 + $0x150] sm:$0xff]  }
   0xf   :  { %195 = vmatprep.mubr.f32.mxu0 %v4255_v2  ;;  %3539 = vmatpush3.bf16.msra.mxu0 %v3866_v36  ;;  %v3880_v42 = vld [vmem:[%s5260_s3 + $0x120] sm:$0xff]   ;;  %v3884_v44 = vld [vmem:[%s5260_s3 + $0x118] sm:$0xff]   ;;  %v3888_v47 = vld [vmem:[%s5260_s3 + $0x110] sm:$0xff]  }
  0x10   :  { %3499 = vmatpush3.bf16.msra.mxu1 %v3854_v21  ;;  %3540 = vmatprep.subr.bf16.mxu0 %v3871_v37  ;;  %v43_v45 = vld [vmem:[%s5257_s0 + $0x78] sm:$0xff]  ;;  %v3891_v48 = vld [vmem:[%s5260_s3 + $0x148] sm:$0xff]   ;;  %v3895_v50 = vld [vmem:[%s5260_s3 + $0x140] sm:$0xff]  }
  0x11   :  { %3500 = vmatprep.subr.bf16.mxu1 %v3855_v22  ;;  %v3892_v49 = vld [vmem:[%s5260_s3 + $0x108] sm:$0xff]   ;;  %v3896_v51 = vld [vmem:[%s5260_s3 + $0x100] sm:$0xff]   ;;  %v3899_v52 = vld [vmem:[%s5260_s3 + $0x278] sm:$0xff]  }
  0x12   :  { %3224 = vmatmul.mubr.msk.f32.gmra.mxu0 %vm59_vm1, %v31_v6  ;;  %v45_v56 = vld [vmem:[%s5259_s2] sm:$0x3] }
  0x13   :  { %201 = vmatprep.mubr.f32.mxu0 %v4255_v2  ;;  %3541 = vmatpush3.bf16.msra.mxu0 %v3872_v38  ;;  %v4475_v58 = vrot.slane %v45_v56, %v49_v55  ;;  %v4477_v59 = vrot.slane %v45_v56, %v53_v57 }
  0x14   :  { %3501 = vmatpush3.bf16.msra.mxu1 %v3856_v23  ;;  %3542 = vmatprep.subr.bf16.mxu0 %v3875_v39 }
  0x15   :  { %3502 = vmatprep.subr.bf16.mxu1 %v3857_v24 }
  0x16   :  { %3225 = vmatmul.mubr.msk.f32.gmra.mxu0 %vm59_vm1, %v32_v7 }
  0x17   :  { %207 = vmatprep.mubr.f32.mxu0 %v4255_v2  ;;  %3543 = vmatpush3.bf16.msra.mxu0 %v3876_v40 }
  0x18   :  { %3503 = vmatpush3.bf16.msra.mxu1 %v3858_v25  ;;  %3544 = vmatprep.subr.bf16.mxu0 %v3879_v41 }
  0x19   :  { %3504 = vmatprep.subr.bf16.mxu1 %v3859_v27 }
  0x1a   :  { %3226 = vmatmul.mubr.msk.f32.gmra.mxu0 %vm59_vm1, %v33_v8 }
  0x1b   :  { %213 = vmatprep.mubr.f32.mxu0 %v4255_v2  ;;  %3545 = vmatpush3.bf16.msra.mxu0 %v3880_v42 }
  0x1c   :  { %3505 = vmatpush3.bf16.msra.mxu1 %v3860_v28  ;;  %3546 = vmatprep.subr.bf16.mxu0 %v3883_v43 }
  0x1d   :  { %3506 = vmatprep.subr.bf16.mxu1 %v3861_v29 }
  0x1e   :  { %3227 = vmatmul.mubr.msk.f32.gmra.mxu0 %vm59_vm1, %v34_v9 }
  0x1f   :  { %219 = vmatprep.mubr.f32.mxu0 %v4255_v2  ;;  %3547 = vmatpush3.bf16.msra.mxu0 %v3884_v44 }
  0x20   :  { %3507 = vmatpush3.bf16.msra.mxu1 %v3862_v31  ;;  %3548 = vmatprep.subr.bf16.mxu0 %v3887_v46 }
  0x21   :  { %3508 = vmatprep.subr.bf16.mxu1 %v3863_v32 }
  0x22   :  { %3228 = vmatmul.mubr.msk.f32.gmra.mxu0 %vm59_vm1, %v35_v10 }
  0x23   :  { %225 = vmatprep.mubr.f32.mxu0 %v4255_v2  ;;  %3549 = vmatpush3.bf16.msra.mxu0 %v3888_v47 }
  0x24   :  { %3509 = vmatpush3.bf16.msra.mxu1 %v3864_v33  ;;  %3550 = vmatprep.subr.bf16.mxu0 %v3891_v48 }
  0x25   :  { %3516 = vmatprep.subr.bf16.mxu1 %v3867_v34 }
  0x26   :  { %3229 = vmatmul.mubr.msk.f32.gmra.mxu0 %vm59_vm1, %v36_v11 }
  0x27   :  { %231 = vmatprep.mubr.f32.mxu0 %v4255_v2  ;;  %3551 = vmatpush3.bf16.msra.mxu0 %v3892_v49 }
  0x28   :  { %3552 = vmatprep.subr.bf16.mxu0 %v3895_v50 }
  0x2a   :  { %3230 = vmatmul.mubr.msk.f32.gmra.mxu0 %vm59_vm1, %v37_v12 }
  0x2b   :  { %237 = vmatprep.mubr.f32.mxu0 %v4255_v2  ;;  %3553 = vmatpush3.bf16.msra.mxu0 %v3896_v51 }
  0x2c   :  { %3582 = vmatprep.subr.bf16.mxu0 %v3899_v52 }
  0x2e   :  { %3231 = vmatmul.mubr.msk.f32.gmra.mxu0 %vm59_vm1, %v38_v13 }
  0x2f   :  { %243 = vmatprep.mubr.f32.mxu0 %v4255_v2 }
  0x32   :  { %3232 = vmatmul.mubr.msk.f32.gmra.mxu0 %vm59_vm1, %v39_v14 }
  0x33   :  { %249 = vmatprep.mubr.f32.mxu0 %v4255_v2 }
  0x36   :  { %3233 = vmatmul.mubr.msk.f32.gmra.mxu0 %vm59_vm1, %v40_v15 }
  0x37   :  { %255 = vmatprep.mubr.f32.mxu0 %v4255_v2 }
  0x3a   :  { %3234 = vmatmul.mubr.msk.f32.gmra.mxu0 %vm59_vm1, %v41_v26 }
  0x3b   :  { %261 = vmatprep.mubr.f32.mxu0 %v4255_v2 }
  0x3e   :  { %3235 = vmatmul.mubr.msk.f32.gmra.mxu0 %vm59_vm1, %v42_v30 }
  0x3f   :  { %267 = vmatprep.mubr.f32.mxu0 %v4255_v2 }
  0x42   :  { %3236 = vmatmul.mubr.msk.f32.gmra.mxu0 %vm59_vm1, %v43_v45 }
  0xc6   :  { %v179_v60 = vpop.f32.mrf.mxu0 }
  0xc7   :  { %v180_v61 = vadd.f32 %v179_v60, %v4475_v58 }
  0xc8   :  { %v181_v62 = vpop.f32.mrf.mxu0 }
  0xc9   :  { %v274_v63 = vsub.f32 0.0, %v180_v61  ;;  %v182_v0 = vadd.f32 %v181_v62, %v4477_v59 }
  0xca   :  { %v185_v1 = vpop.f32.mrf.mxu0 }
  0xcb   :  { %v306_v3 = vmul.f32 1.442695, %v274_v63  ;;  %v275_v4 = vsub.f32 0.0, %v182_v0  ;;  %v186_v29 = vadd.f32 %v185_v1, %v4475_v58 }
  0xcc   :  { %v187_v5 = vpop.f32.mrf.mxu0 }
  0xcd   :  { %4105 = vpow2.f32 %v306_v3  ;;  %v308_v6 = vmul.f32 1.442695, %v275_v4  ;;  %v188_v7 = vadd.f32 %v187_v5, %v4477_v59  ;;  %v276_v35 = vsub.f32 0.0, %v186_v29 }
  0xce   :  { %v191_v8 = vpop.f32.mrf.mxu0 }
  0xcf   :  { %4107 = vpow2.f32 %v308_v6  ;;  %v277_v9 = vsub.f32 0.0, %v188_v7  ;;  %v192_v10 = vadd.f32 %v191_v8, %v4475_v58  ;;  %v310_v43 = vmul.f32 1.442695, %v276_v35 }
  0xd0   :  { %v193_v11 = vpop.f32.mrf.mxu0 }
  0xd1   :  { %v312_v12 = vmul.f32 1.442695, %v277_v9  ;;  %v278_v13 = vsub.f32 0.0, %v192_v10  ;;  %v194_v14 = vadd.f32 %v193_v11, %v4477_v59 }
  0xd2   :  { %v4484_v15 = vpop.f32.mrf.mxu0 }
  0xd3   :  { %4109 = vpow2.f32 %v312_v12  ;;  %v314_v16 = vmul.f32 1.442695, %v278_v13  ;;  %v279_v17 = vsub.f32 0.0, %v194_v14 }
  0xd4   :  { %v199_v18 = vpop.f32.mrf.mxu0 }
  0xd5   :  { %4111 = vpow2.f32 %v314_v16  ;;  %v316_v19 = vmul.f32 1.442695, %v279_v17  ;;  %v200_v32 = vadd.f32 %v199_v18, %v4477_v59 }
  0xd6   :  { %v203_v20 = vpop.f32.mrf.mxu0 }
  0xd7   :  { %4113 = vpow2.f32 %v316_v19  ;;  %v281_v38 = vsub.f32 0.0, %v200_v32  ;;  %v204_v40 = vadd.f32 %v203_v20, %v4475_v58 }
  0xd8   :  { %v205_v21 = vpop.f32.mrf.mxu0 }
  0xd9   :  { %v206_v22 = vadd.f32 %v205_v21, %v4477_v59  ;;  %v320_v45 = vmul.f32 1.442695, %v281_v38 }
  0xda   :  { %v4106_v23 = vpop.eup %4105  ;;  %v4487_v24 = vpop.f32.mrf.mxu0 }
  0xdb   :  { %v370_v25 = vadd.f32 1.0, %v4106_v23  ;;  %v283_v26 = vsub.f32 0.0, %v206_v22 }
  0xdc   :  { %v4108_v27 = vpop.eup %4107  ;;  %v4489_v28 = vpop.f32.mrf.mxu0 }
  0xdd   :  { %v371_v30 = vadd.f32 1.0, %v4108_v27  ;;  %v324_v31 = vmul.f32 1.442695, %v283_v26  ;;  %4115 = vrcp.f32 %v370_v25 }
  0xde   :  { %v4493_v34 = vpop.f32.mrf.mxu0 }
  0xdf   :  { %4117 = vrcp.f32 %v371_v30 }
  0xe0   :  { %v4110_v33 = vpop.eup %4109  ;;  %4119 = vpow2.f32 %v324_v31  ;;  %v217_v42 = vpop.f32.mrf.mxu0 }
  0xe1   :  { %v373_v36 = vadd.f32 1.0, %v4110_v33 }
  0xe2   :  { %v4112_v37 = vpop.eup %4111 }
  0xe3   :  { %4121 = vrcp.f32 %v373_v36  ;;  %v374_v39 = vadd.f32 1.0, %v4112_v37 }
  0xe4   :  { %v4114_v41 = vpop.eup %4113 }
  0xe5   :  { %4123 = vrcp.f32 %v374_v39  ;;  %v375_v44 = vadd.f32 1.0, %v4114_v41 }
  0xe6   :  { %10 = vsyncpa [#allocation4], 0  ;;  %v282_v46 = vsub.f32 0.0, %v204_v40  ;;  %v218_v47 = vadd.f32 %v217_v42, %v4477_v59  ;;  %v3868_v54 = vld [vmem:[%s5260_s3 + $0xb8] sm:$0xff]   ;;  %v3869_v56 = vld [vmem:[%s5260_s3 + $0xf0] sm:$0xff]   ;;  %v4521_v12 = vpop.f32.mrf.mxu0  ;;  %v198_v25 = vadd.f32 %v4484_v15, %v4475_v58  ;;  %v212_v30 = vadd.f32 %v4489_v28, %v4477_v59  ;;  %s4256_s14 = smov [#allocation3]  }
  0xe7   :  { %4125 = vrcp.f32 %v375_v44  ;;  %v3870_v62 = vld [vmem:[%s5260_s3 + $0xb0] sm:$0xff]   ;;  %v3873_v1 = vld [vmem:[%s5260_s3 + $0xe8] sm:$0xff]   ;;  %v3900_v7 = vld [vmem:[%s5260_s3 + $0x238] sm:$0xff]   ;;  %v216_v41 = vadd.f32 %v4493_v34, %v4475_v58  ;;  %vm26_vm2 = vcmask 261120   ;;  %s3211_s15 = sshll.u32 %s4256_s14, 4  ;;  %s3212_s15 = int_to_ptr.vmem [resolvable:$true] %s3211_s15 }
  0xe8   :  { %4127 = vpow2.f32 %v310_v43  ;;  %v322_v49 = vmul.f32 1.442695, %v282_v46  ;;  %v287_v50 = vsub.f32 0.0, %v218_v47  ;;  %v3874_v5 = vld [vmem:[%s5260_s3 + $0xa8] sm:$0xff]   ;;  %v3877_v9 = vld [vmem:[%s5260_s3 + $0xe0] sm:$0xff]   ;;  %v3903_v10 = vld [vmem:[%s5260_s3 + $0x270] sm:$0xff]   ;;  %v4535_v21 = vpop.f32.mrf.mxu0  ;;  %p4238_p1 = scmp.lt.s32.totalorder %s3212_s15, %s3212_s15 }
  0xe9   :  { %4129 = vpow2.f32 %v320_v45  ;;  %v3878_v14 = vld [vmem:[%s5260_s3 + $0xa0] sm:$0xff]   ;;  %v3904_v16 = vld [vmem:[%s5260_s3 + $0x230] sm:$0xff]   ;;  %v3881_v17 = vld [vmem:[%s5260_s3 + $0xd8] sm:$0xff]   ;;  %v280_v35 = vsub.f32 0.0, %v198_v25  ;;  %v285_v39 = vsub.f32 0.0, %v212_v30  ;;  %27 = vst.msk [vmem:[#allocation2] sm:$0xff] %vm26_vm2, %v4255_v2 }
  0xea   :  { %v4116_v48 = vpop.eup %4115  ;;  %4131 = vpow2.f32 %v322_v49  ;;  %v332_v60 = vmul.f32 1.442695, %v287_v50  ;;  %v3907_v19 = vld [vmem:[%s5260_s3 + $0x268] sm:$0xff]   ;;  %v3882_v23 = vld [vmem:[%s5260_s3 + $0x98] sm:$0xff]   ;;  %v3885_v27 = vld [vmem:[%s5260_s3 + $0xd0] sm:$0xff]   ;;  %v4553_v33 = vpop.f32.mrf.mxu0  ;;  %v286_v49 = vsub.f32 0.0, %v216_v41 }
  0xeb   :  { %v434_v55 = vpack.c.bf16 %v4116_v48, %v4116_v48  ;;  %v3908_v26 = vld [vmem:[%s5260_s3 + $0x228] sm:$0xff]   ;;  %v3911_v29 = vld [vmem:[%s5260_s3 + $0x260] sm:$0xff]   ;;  %v3886_v36 = vld [vmem:[%s5260_s3 + $0x90] sm:$0xff]   ;;  %v318_v43 = vmul.f32 1.442695, %v280_v35  ;;  %s4233_s16 = scalar_lea.vmem %s3212_s15, 128 }
  0xec   :  { %v4118_v51 = vpop.eup %4117  ;;  %v3912_v37 = vld [vmem:[%s5260_s3 + $0x220] sm:$0xff]   ;;  %v3889_v28 = vld [vmem:[%s5260_s3 + $0xc8] sm:$0xff]   ;;  %v3915_v38 = vld [vmem:[%s5260_s3 + $0x258] sm:$0xff]   ;;  %v229_v42 = vpop.f32.mrf.mxu0  ;;  %v328_v47 = vmul.f32 1.442695, %v285_v39  ;;  %p4234_p0 = scmp.ne.s32.totalorder %s3212_s15, %s4233_s16  ;;  %p4239_p2 = scmp.lt.s32.totalorder %s4233_s16, %s4233_s16 }
  0xed   :  { %v4120_v52 = vpop.eup %4119  ;;  %v435_v53 = vpack.c.bf16 %v4118_v51, %v4118_v51  ;;  %v3890_v44 = vld [vmem:[%s5260_s3 + $0x88] sm:$0xff]   ;;  %v3916_v45 = vld [vmem:[%s5260_s3 + $0x218] sm:$0xff]   ;;  %v3893_v46 = vld [vmem:[%s5260_s3 + $0xc0] sm:$0xff]   ;;  %v230_v48 = vadd.f32 %v229_v42, %v4477_v59 }
  0xee   :  { %v379_v57 = vadd.f32 1.0, %v4120_v52  ;;  %v3919_v34 = vld [vmem:[%s5260_s3 + $0x250] sm:$0xff]   ;;  %v3894_v50 = vld [vmem:[%s5260_s3 + $0x80] sm:$0xff]   ;;  %v3940_v35 = vld [vmem:[%s5260_s3 + $0x328] sm:$0xff]   ;;  %p4240_p3 = por %p4239_p2, %p4238_p1 }
  0xef   :  { %1106 = vmatprep.mubr.bf16.mxu1 %v435_v53  ;;  %v3920_v51 = vld [vmem:[%s5260_s3 + $0x210] sm:$0xff]   ;;  %v3897_v53 = vld [vmem:[%s5260_s3 + $0x1f8] sm:$0xff]   ;;  %v3944_v42 = vld [vmem:[%s5260_s3 + $0x320] sm:$0xff]  }
  0xf0   :  { %v4122_v61 = vpop.eup %4121  ;;  %1107 = vmatmul.mubr.bf16.vlgmr.msra.gmra.mxu1 %v434_v55  ;;  %4133 = vrcp.f32 %v379_v57  ;;  %v330_v57 = vmul.f32 1.442695, %v286_v49  ;;  %v3936_v25 = vld [vmem:[%s5260_s3 + $0x330] sm:$0xff]   ;;  %v3948_v49 = vld [vmem:[%s5260_s3 + $0x318] sm:$0xff]   ;;  %v3941_v2 = vld [vmem:[%s5260_s3 + $0x2e0] sm:$0xff]   ;;  %p4241_p4 = pnand %p4240_p3, %p4234_p0 }
  0xf1   :  { %3517 = vmatpush3.bf16.msra.mxu1 %v3868_v54  ;;  %v437_v63 = vpack.c.bf16 %v4122_v61, %v4122_v61  ;;  %4135 = vpow2.f32 %v332_v60  ;;  %v3923_v54 = vld [vmem:[%s5260_s3 + $0x248] sm:$0xff]   ;;  %v3898_v60 = vld [vmem:[%s5260_s3 + $0x1b8] sm:$0xff]   ;;  %v3918_v41 = vld [vmem:[%s5260_s3 + $0x190] sm:$0xff]  }
  0xf2   :  { %v4124_v0 = vpop.eup %4123  ;;  %3518 = vmatprep.subr.bf16.mxu1 %v3869_v56  ;;  %v291_v56 = vsub.f32 0.0, %v230_v48  ;;  %v3924_v61 = vld [vmem:[%s5260_s3 + $0x208] sm:$0xff]  }
  0xf3   :  { %1242 = vmatprep.mubr.bf16.mxu1 %v437_v63  ;;  %v438_v4 = vpack.c.bf16 %v4124_v0, %v4124_v0  ;;  %v3901_v63 = vld [vmem:[%s5260_s3 + $0x1f0] sm:$0xff]   ;;  %v3922_v48 = vld [vmem:[%s5260_s3 + $0x188] sm:$0xff]  }
  0xf4   :  { %v4126_v3 = vpop.eup %4125 }
  0xf5   :  { %3519 = vmatpush3.bf16.msra.mxu1 %v3870_v62  ;;  %v439_v6 = vpack.c.bf16 %v4126_v3, %v4126_v3  ;;  %v4128_v8 = vpop.eup %4127  ;;  %v340_v3 = vmul.f32 1.442695, %v291_v56 }
  0xf6   :  { %3520 = vmatprep.subr.bf16.mxu1 %v3873_v1  ;;  %v4130_v11 = vpop.eup %4129  ;;  %v372_v13 = vadd.f32 1.0, %v4128_v8  ;;  %v3927_v1 = vld [vmem:[%s5260_s3 + $0x240] sm:$0xff]   ;;  %v3931_v8 = vld [vmem:[%s5260_s3 + $0x378] sm:$0xff]  }
  0xf7   :  { %1378 = vmatprep.mubr.bf16.mxu0 %v439_v6  ;;  %v377_v18 = vadd.f32 1.0, %v4130_v11  ;;  %v4132_v20 = vpop.eup %4131  ;;  %v3928_v6 = vld [vmem:[%s5260_s3 + $0x200] sm:$0xff]   ;;  %v3906_v11 = vld [vmem:[%s5260_s3 + $0x1a8] sm:$0xff]  }
  0xf8   :  { %1379 = vmatmul.mubr.bf16.vlgmr.msra.gmra.mxu0 %v438_v4  ;;  %4137 = vrcp.f32 %v372_v13  ;;  %v378_v32 = vadd.f32 1.0, %v4132_v20  ;;  %v3932_v13 = vld [vmem:[%s5260_s3 + $0x338] sm:$0xff]   ;;  %v4630_v20 = vpop.f32.mrf.mxu0 }
  0xf9   :  { %3521 = vmatpush3.bf16.msra.mxu1 %v3874_v5  ;;  %3583 = vmatpush3.bf16.msra.mxu0 %v3900_v7  ;;  %4139 = vrcp.f32 %v377_v18  ;;  %v3902_v5 = vld [vmem:[%s5260_s3 + $0x1b0] sm:$0xff]   ;;  %v3905_v7 = vld [vmem:[%s5260_s3 + $0x1e8] sm:$0xff]  }
  0xfa   :  { %3522 = vmatprep.subr.bf16.mxu1 %v3877_v9  ;;  %3584 = vmatprep.subr.bf16.mxu0 %v3903_v10  ;;  %4141 = vrcp.f32 %v378_v32  ;;  %v4644_v30 = vpop.f32.mrf.mxu0  ;;  %v210_v32 = vadd.f32 %v4487_v24, %v4475_v58 }
  0xfc   :  { %v4662_v39 = vpop.f32.mrf.mxu0 }
  0xfd   :  { %v4134_v22 = vpop.eup %4133  ;;  %3523 = vmatpush3.bf16.msra.mxu1 %v3878_v14  ;;  %3585 = vmatpush3.bf16.msra.mxu0 %v3904_v16  ;;  %v3909_v16 = vld [vmem:[%s5260_s3 + $0x1e0] sm:$0xff]  }
  0xfe   :  { %3524 = vmatprep.subr.bf16.mxu1 %v3881_v17  ;;  %3586 = vmatprep.subr.bf16.mxu0 %v3907_v19  ;;  %v443_v15 = vpack.c.bf16 %v4134_v22, %v4134_v22  ;;  %v4136_v31 = vpop.eup %4135  ;;  %v3935_v17 = vld [vmem:[%s5260_s3 + $0x370] sm:$0xff]  }
  0xff   :  { %v383_v40 = vadd.f32 1.0, %v4136_v31  ;;  %v3914_v31 = vld [vmem:[%s5260_s3 + $0x198] sm:$0xff]  }
 0x100   :  { %1650 = vmatprep.mubr.bf16.mxu0 %v443_v15 }
 0x101   :  { %3525 = vmatpush3.bf16.msra.mxu1 %v3882_v23  ;;  %3587 = vmatpush3.bf16.msra.mxu0 %v3908_v26  ;;  %4143 = vrcp.f32 %v383_v40  ;;  %v3910_v23 = vld [vmem:[%s5260_s3 + $0x1a0] sm:$0xff]   ;;  %v3913_v26 = vld [vmem:[%s5260_s3 + $0x1d8] sm:$0xff]   ;;  %v284_v40 = vsub.f32 0.0, %v210_v32 }
 0x102   :  { %3526 = vmatprep.subr.bf16.mxu1 %v3885_v27  ;;  %3588 = vmatprep.subr.bf16.mxu0 %v3911_v29  ;;  %4145 = vpow2.f32 %v318_v43  ;;  %v3939_v29 = vld [vmem:[%s5260_s3 + $0x368] sm:$0xff]   ;;  %v3947_v43 = vld [vmem:[%s5260_s3 + $0x358] sm:$0xff]  }
 0x103   :  { %4147 = vpow2.f32 %v328_v47  ;;  %v241_v47 = vpop.f32.mrf.mxu0 }
 0x104   :  { %4149 = vpow2.f32 %v330_v57  ;;  %v3929_v57 = vld [vmem:[%s5260_s3 + $0x2f8] sm:$0xff]  }
 0x105   :  { %3527 = vmatpush3.bf16.msra.mxu1 %v3886_v36  ;;  %3589 = vmatpush3.bf16.msra.mxu0 %v3912_v37  ;;  %v4138_v52 = vpop.eup %4137  ;;  %4151 = vpow2.f32 %v340_v3  ;;  %v3917_v36 = vld [vmem:[%s5260_s3 + $0x1d0] sm:$0xff]   ;;  %v3943_v37 = vld [vmem:[%s5260_s3 + $0x360] sm:$0xff]  }
 0x106   :  { %3528 = vmatprep.subr.bf16.mxu1 %v3889_v28  ;;  %3590 = vmatprep.subr.bf16.mxu0 %v3915_v38  ;;  %v4140_v55 = vpop.eup %4139  ;;  %v436_v62 = vpack.c.bf16 %v4138_v52, %v4138_v52  ;;  %v224_v28 = vadd.f32 %v4535_v21, %v4477_v59  ;;  %v3921_v21 = vld [vmem:[%s5260_s3 + $0x1c8] sm:$0xff]   ;;  %v242_v52 = vadd.f32 %v241_v47, %v4477_v59  ;;  %v3979_v47 = vld [vmem:[%s5260_s3 + $0x458] sm:$0xff]  }
 0x107   :  { %v441_v0 = vpack.c.bf16 %v4140_v55, %v4140_v55  ;;  %v4142_v4 = vpop.eup %4141  ;;  %v3952_v55 = vld [vmem:[%s5260_s3 + $0x310] sm:$0xff]  }
 0x108   :  { %v442_v10 = vpack.c.bf16 %v4142_v4, %v4142_v4  ;;  %v3933_v4 = vld [vmem:[%s5260_s3 + $0x2f0] sm:$0xff]  }
 0x109   :  { %3529 = vmatpush3.bf16.msra.mxu1 %v3890_v44  ;;  %3591 = vmatpush3.bf16.msra.mxu0 %v3916_v45  ;;  %v289_v44 = vsub.f32 0.0, %v224_v28  ;;  %v3946_v28 = vld [vmem:[%s5260_s3 + $0x298] sm:$0xff]  }
 0x10a   :  { %3530 = vmatprep.subr.bf16.mxu1 %v3893_v46  ;;  %3592 = vmatprep.subr.bf16.mxu0 %v3919_v34  ;;  %v228_v46 = vadd.f32 %v4553_v33, %v4475_v58  ;;  %v326_v34 = vmul.f32 1.442695, %v284_v40  ;;  %v3951_v33 = vld [vmem:[%s5260_s3 + $0x350] sm:$0xff]  }
 0x10b   :  { %v3949_v40 = vld [vmem:[%s5260_s3 + $0x2d0] sm:$0xff]  }
 0x10d   :  { %3531 = vmatpush3.bf16.msra.mxu1 %v3894_v50  ;;  %3593 = vmatpush3.bf16.msra.mxu0 %v3920_v51  ;;  %v3925_v50 = vld [vmem:[%s5260_s3 + $0x1c0] sm:$0xff]   ;;  %v336_v51 = vmul.f32 1.442695, %v289_v44 }
 0x10e   :  { %3560 = vmatprep.subr.bf16.mxu1 %v3897_v53  ;;  %3594 = vmatprep.subr.bf16.mxu0 %v3923_v54  ;;  %v4144_v9 = vpop.eup %4143  ;;  %v290_v53 = vsub.f32 0.0, %v228_v46  ;;  %v3926_v54 = vld [vmem:[%s5260_s3 + $0x180] sm:$0xff]  }
 0x10f   :  { %v4146_v14 = vpop.eup %4145  ;;  %v447_v19 = vpack.c.bf16 %v4144_v9, %v4144_v9  ;;  %v3934_v9 = vld [vmem:[%s5260_s3 + $0x2b0] sm:$0xff]   ;;  %v3976_v46 = vld [vmem:[%s5260_s3 + $0x420] sm:$0xff]  }
 0x110   :  { %1243 = vmatmul.mubr.bf16.vlgmr.msra.gmra.mxu1 %v436_v62  ;;  %v4148_v18 = vpop.eup %4147  ;;  %v376_v22 = vadd.f32 1.0, %v4146_v14  ;;  %v295_v62 = vsub.f32 0.0, %v242_v52  ;;  %v3980_v52 = vld [vmem:[%s5260_s3 + $0x418] sm:$0xff]  }
 0x111   :  { %3561 = vmatpush3.bf16.msra.mxu1 %v3898_v60  ;;  %3595 = vmatpush3.bf16.msra.mxu0 %v3924_v61  ;;  %v381_v27 = vadd.f32 1.0, %v4148_v18  ;;  %v4150_v15 = vpop.eup %4149  ;;  %v3955_v60 = vld [vmem:[%s5260_s3 + $0x348] sm:$0xff]   ;;  %v3964_v18 = vld [vmem:[%s5260_s3 + $0x438] sm:$0xff]  }
 0x112   :  { %3562 = vmatprep.subr.bf16.mxu1 %v3901_v63  ;;  %1514 = vmatprep.mubr.bf16.mxu1 %v441_v0  ;;  %4153 = vrcp.f32 %v376_v22  ;;  %v4152_v24 = vpop.eup %4151  ;;  %v382_v38 = vadd.f32 1.0, %v4150_v15  ;;  %v338_v63 = vmul.f32 1.442695, %v290_v53  ;;  %v3930_v0 = vld [vmem:[%s5260_s3 + $0x2b8] sm:$0xff]   ;;  %v3967_v22 = vld [vmem:[%s5260_s3 + $0x470] sm:$0xff]   ;;  %v3957_v53 = vld [vmem:[%s5260_s3 + $0x2c0] sm:$0xff]  }
 0x113   :  { %3596 = vmatprep.subr.bf16.mxu0 %v3927_v1  ;;  %4155 = vrcp.f32 %v381_v27  ;;  %v387_v45 = vadd.f32 1.0, %v4152_v24  ;;  %v3956_v1 = vld [vmem:[%s5260_s3 + $0x308] sm:$0xff]   ;;  %v3968_v15 = vld [vmem:[%s5260_s3 + $0x430] sm:$0xff]   ;;  %v222_v24 = vadd.f32 %v4521_v12, %v4475_v58 }
 0x114   :  { %4157 = vrcp.f32 %v382_v38  ;;  %v3972_v38 = vld [vmem:[%s5260_s3 + $0x428] sm:$0xff]  }
 0x115   :  { %3563 = vmatpush3.bf16.msra.mxu1 %v3902_v5  ;;  %3597 = vmatpush3.bf16.msra.mxu0 %v3928_v6  ;;  %4159 = vrcp.f32 %v387_v45  ;;  %v3959_v6 = vld [vmem:[%s5260_s3 + $0x340] sm:$0xff]   ;;  %v288_v44 = vsub.f32 0.0, %v222_v24  ;;  %v3950_v45 = vld [vmem:[%s5260_s3 + $0x290] sm:$0xff]  }
 0x116   :  { %3564 = vmatprep.subr.bf16.mxu1 %v3905_v7  ;;  %3626 = vmatprep.subr.bf16.mxu0 %v3931_v8  ;;  %4161 = vpow2.f32 %v326_v34  ;;  %v348_v7 = vmul.f32 1.442695, %v295_v62  ;;  %v3961_v62 = vld [vmem:[%s5260_s3 + $0x3f8] sm:$0xff]  }
 0x117   :  { %4163 = vpow2.f32 %v336_v51  ;;  %v334_v51 = vmul.f32 1.442695, %v288_v44  ;;  %v3981_v44 = vld [vmem:[%s5260_s3 + $0x3d0] sm:$0xff]  }
 0x118   :  { %1651 = vmatmul.mubr.bf16.vlgmr.msra.gmra.mxu0 %v442_v10  ;;  %4165 = vpow2.f32 %v338_v63  ;;  %v3960_v10 = vld [vmem:[%s5260_s3 + $0x300] sm:$0xff]   ;;  %v3987_v63 = vld [vmem:[%s5260_s3 + $0x448] sm:$0xff]  }
 0x119   :  { %3565 = vmatpush3.bf16.msra.mxu1 %v3906_v11  ;;  %3627 = vmatpush3.bf16.msra.mxu0 %v3932_v13  ;;  %v3937_v11 = vld [vmem:[%s5260_s3 + $0x2e8] sm:$0xff]   ;;  %v3963_v13 = vld [vmem:[%s5260_s3 + $0x478] sm:$0xff]   ;;  %4167 = vpow2.f32 %v348_v7  ;;  %v3965_v7 = vld [vmem:[%s5260_s3 + $0x3f0] sm:$0xff]  }
 0x11a   :  { %3566 = vmatprep.subr.bf16.mxu1 %v3909_v16  ;;  %3628 = vmatprep.subr.bf16.mxu0 %v3935_v17  ;;  %v3938_v17 = vld [vmem:[%s5260_s3 + $0x2a8] sm:$0xff]  }
 0x11b   :  { %1922 = vmatprep.mubr.bf16.mxu0 %v447_v19 }
 0x11d   :  { %3567 = vmatpush3.bf16.msra.mxu1 %v3910_v23  ;;  %3629 = vmatpush3.bf16.msra.mxu0 %v3936_v25 }
 0x11e   :  { %3568 = vmatprep.subr.bf16.mxu1 %v3913_v26  ;;  %3630 = vmatprep.subr.bf16.mxu0 %v3939_v29  ;;  %v4741_v26 = vpop.f32.mrf.mxu0  ;;  %v3942_v29 = vld [vmem:[%s5260_s3 + $0x2a0] sm:$0xff]  }
 0x11f   :  { %v4154_v56 = vpop.eup %4153 }
 0x120   :  { %v4156_v61 = vpop.eup %4155  ;;  %v440_v3 = vpack.c.bf16 %v4154_v56, %v4154_v56 }
 0x121   :  { %3569 = vmatpush3.bf16.msra.mxu1 %v3914_v31  ;;  %3631 = vmatpush3.bf16.msra.mxu0 %v3940_v35  ;;  %v445_v5 = vpack.c.bf16 %v4156_v61, %v4156_v61  ;;  %v4158_v8 = vpop.eup %4157  ;;  %v3945_v31 = vld [vmem:[%s5260_s3 + $0x2d8] sm:$0xff]   ;;  %v3971_v35 = vld [vmem:[%s5260_s3 + $0x468] sm:$0xff]  }
 0x122   :  { %3570 = vmatprep.subr.bf16.mxu1 %v3917_v36  ;;  %3632 = vmatprep.subr.bf16.mxu0 %v3943_v37  ;;  %v4160_v14 = vpop.eup %4159  ;;  %v446_v16 = vpack.c.bf16 %v4158_v8, %v4158_v8  ;;  %v4755_v36 = vpop.f32.mrf.mxu0 }
 0x123   :  { %v4162_v19 = vpop.eup %4161  ;;  %v451_v25 = vpack.c.bf16 %v4160_v14, %v4160_v14  ;;  %v3992_v14 = vld [vmem:[%s5260_s3 + $0x400] sm:$0xff]  }
 0x124   :  { %v4164_v23 = vpop.eup %4163  ;;  %v380_v27 = vadd.f32 1.0, %v4162_v19 }
 0x125   :  { %3571 = vmatpush3.bf16.msra.mxu1 %v3918_v41  ;;  %3633 = vmatpush3.bf16.msra.mxu0 %v3944_v42  ;;  %v385_v32 = vadd.f32 1.0, %v4164_v23  ;;  %v4166_v37 = vpop.eup %4165  ;;  %v3975_v41 = vld [vmem:[%s5260_s3 + $0x460] sm:$0xff]   ;;  %v236_v42 = vadd.f32 %v4644_v30, %v4477_v59  ;;  %v3953_v30 = vld [vmem:[%s5260_s3 + $0x2c8] sm:$0xff]  }
 0x126   :  { %3572 = vmatprep.subr.bf16.mxu1 %v3921_v21  ;;  %3634 = vmatprep.subr.bf16.mxu0 %v3947_v43  ;;  %4169 = vrcp.f32 %v380_v27  ;;  %v4168_v12 = vpop.eup %4167  ;;  %v386_v21 = vadd.f32 1.0, %v4166_v37  ;;  %v4773_v43 = vpop.f32.mrf.mxu0  ;;  %v3999_v27 = vld [vmem:[%s5260_s3 + $0x570] sm:$0xff]  }
 0x127   :  { %4171 = vrcp.f32 %v385_v32  ;;  %v293_v34 = vsub.f32 0.0, %v236_v42  ;;  %v4000_v37 = vld [vmem:[%s5260_s3 + $0x530] sm:$0xff]   ;;  %v3978_v42 = vld [vmem:[%s5260_s3 + $0x398] sm:$0xff]  }
 0x128   :  { %4173 = vrcp.f32 %v386_v21  ;;  %v4004_v21 = vld [vmem:[%s5260_s3 + $0x528] sm:$0xff]  }
 0x129   :  { %3573 = vmatpush3.bf16.msra.mxu1 %v3922_v48  ;;  %3635 = vmatpush3.bf16.msra.mxu0 %v3948_v49  ;;  %v391_v48 = vadd.f32 1.0, %v4168_v12  ;;  %v240_v49 = vadd.f32 %v4662_v39, %v4475_v58  ;;  %v3983_v39 = vld [vmem:[%s5260_s3 + $0x450] sm:$0xff]   ;;  %v234_v12 = vadd.f32 %v4630_v20, %v4475_v58 }
 0x12a   :  { %3574 = vmatprep.subr.bf16.mxu1 %v3925_v50  ;;  %3636 = vmatprep.subr.bf16.mxu0 %v3951_v33  ;;  %v253_v50 = vpop.f32.mrf.mxu0  ;;  %v3954_v33 = vld [vmem:[%s5260_s3 + $0x288] sm:$0xff]  }
 0x12b   :  { %4175 = vrcp.f32 %v391_v48  ;;  %v294_v56 = vsub.f32 0.0, %v240_v49  ;;  %v3982_v48 = vld [vmem:[%s5260_s3 + $0x390] sm:$0xff]   ;;  %v4008_v49 = vld [vmem:[%s5260_s3 + $0x520] sm:$0xff]  }
 0x12c   :  { %4177 = vpow2.f32 %v334_v51 }
 0x12d   :  { %3575 = vmatpush3.bf16.msra.mxu1 %v3926_v54  ;;  %3637 = vmatpush3.bf16.msra.mxu0 %v3952_v55  ;;  %v344_v54 = vmul.f32 1.442695, %v293_v34  ;;  %v254_v55 = vadd.f32 %v253_v50, %v4477_v59  ;;  %v292_v34 = vsub.f32 0.0, %v234_v12  ;;  %v4011_v50 = vld [vmem:[%s5260_s3 + $0x558] sm:$0xff]   ;;  %v4035_v12 = vld [vmem:[%s5260_s3 + $0x668] sm:$0xff]  }
 0x12e   :  { %3604 = vmatprep.subr.bf16.mxu1 %v3929_v57  ;;  %3638 = vmatprep.subr.bf16.mxu0 %v3955_v60  ;;  %v3958_v57 = vld [vmem:[%s5260_s3 + $0x280] sm:$0xff]   ;;  %v3984_v60 = vld [vmem:[%s5260_s3 + $0x410] sm:$0xff]  }
 0x12f   :  { %4179 = vpow2.f32 %v344_v54  ;;  %v342_v54 = vmul.f32 1.442695, %v292_v34 }
 0x130   :  { %1515 = vmatmul.mubr.bf16.vlgmr.msra.gmra.mxu1 %v440_v3  ;;  %v346_v3 = vmul.f32 1.442695, %v294_v56  ;;  %v3989_v56 = vld [vmem:[%s5260_s3 + $0x3c0] sm:$0xff]  }
 0x131   :  { %3605 = vmatpush3.bf16.msra.mxu1 %v3930_v0  ;;  %3639 = vmatpush3.bf16.msra.mxu0 %v3956_v1  ;;  %v299_v1 = vsub.f32 0.0, %v254_v55  ;;  %v4012_v55 = vld [vmem:[%s5260_s3 + $0x518] sm:$0xff]  }
 0x132   :  { %3606 = vmatprep.subr.bf16.mxu1 %v3933_v4  ;;  %1786 = vmatprep.mubr.bf16.mxu1 %v445_v5  ;;  %v3962_v4 = vld [vmem:[%s5260_s3 + $0x3b8] sm:$0xff]   ;;  %v3988_v5 = vld [vmem:[%s5260_s3 + $0x408] sm:$0xff]   ;;  %4181 = vpow2.f32 %v346_v3 }
 0x133   :  { %3640 = vmatprep.subr.bf16.mxu0 %v3959_v6  ;;  %v4170_v61 = vpop.eup %4169  ;;  %v4019_v3 = vld [vmem:[%s5260_s3 + $0x548] sm:$0xff]  }
 0x134   :  { %v4172_v0 = vpop.eup %4171  ;;  %v444_v6 = vpack.c.bf16 %v4170_v61, %v4170_v61 }
 0x135   :  { %3607 = vmatpush3.bf16.msra.mxu1 %v3934_v9  ;;  %3641 = vmatpush3.bf16.msra.mxu0 %v3960_v10  ;;  %v449_v8 = vpack.c.bf16 %v4172_v0, %v4172_v0  ;;  %v3991_v9 = vld [vmem:[%s5260_s3 + $0x440] sm:$0xff]   ;;  %v356_v10 = vmul.f32 1.442695, %v299_v1  ;;  %v3993_v1 = vld [vmem:[%s5260_s3 + $0x4f8] sm:$0xff]  }
 0x136   :  { %3608 = vmatprep.subr.bf16.mxu1 %v3937_v11  ;;  %3670 = vmatprep.subr.bf16.mxu0 %v3963_v13  ;;  %v4174_v11 = vpop.eup %4173  ;;  %v3966_v13 = vld [vmem:[%s5260_s3 + $0x3b0] sm:$0xff]  }
 0x137   :  { %4183 = vpow2.f32 %v356_v10  ;;  %v450_v19 = vpack.c.bf16 %v4174_v11, %v4174_v11  ;;  %v3997_v10 = vld [vmem:[%s5260_s3 + $0x4f0] sm:$0xff]  }
 0x138   :  { %1923 = vmatmul.mubr.bf16.vlgmr.msra.gmra.mxu0 %v446_v16  ;;  %v3969_v16 = vld [vmem:[%s5260_s3 + $0x3e8] sm:$0xff]  }
 0x139   :  { %3609 = vmatpush3.bf16.msra.mxu1 %v3938_v17  ;;  %3671 = vmatpush3.bf16.msra.mxu0 %v3964_v18  ;;  %v3995_v17 = vld [vmem:[%s5260_s3 + $0x578] sm:$0xff]   ;;  %v4176_v18 = vpop.eup %4175 }
 0x13a   :  { %3610 = vmatprep.subr.bf16.mxu1 %v3941_v2  ;;  %3672 = vmatprep.subr.bf16.mxu0 %v3967_v22  ;;  %v3970_v2 = vld [vmem:[%s5260_s3 + $0x3a8] sm:$0xff]   ;;  %v3996_v22 = vld [vmem:[%s5260_s3 + $0x538] sm:$0xff]   ;;  %v4178_v23 = vpop.eup %4177 }
 0x13b   :  { %2194 = vmatprep.mubr.bf16.mxu0 %v451_v25  ;;  %v3973_v25 = vld [vmem:[%s5260_s3 + $0x3e0] sm:$0xff]   ;;  %v384_v32 = vadd.f32 1.0, %v4178_v23 }
 0x13d   :  { %3611 = vmatpush3.bf16.msra.mxu1 %v3942_v29  ;;  %3673 = vmatpush3.bf16.msra.mxu0 %v3968_v15  ;;  %v4180_v29 = vpop.eup %4179  ;;  %v455_v15 = vpack.c.bf16 %v4176_v18, %v4176_v18  ;;  %4185 = vrcp.f32 %v384_v32  ;;  %v4024_v18 = vld [vmem:[%s5260_s3 + $0x500] sm:$0xff]   ;;  %v4031_v32 = vld [vmem:[%s5260_s3 + $0x670] sm:$0xff]  }
 0x13e   :  { %3612 = vmatprep.subr.bf16.mxu1 %v3945_v31  ;;  %3674 = vmatprep.subr.bf16.mxu0 %v3971_v35  ;;  %v4850_v31 = vpop.f32.mrf.mxu0  ;;  %v3974_v35 = vld [vmem:[%s5260_s3 + $0x3a0] sm:$0xff]   ;;  %v389_v24 = vadd.f32 1.0, %v4180_v29 }
 0x140   :  { %4187 = vrcp.f32 %v389_v24  ;;  %v4006_v24 = vld [vmem:[%s5260_s3 + $0x4a0] sm:$0xff]  }
 0x141   :  { %3613 = vmatpush3.bf16.msra.mxu1 %v3946_v28  ;;  %3675 = vmatpush3.bf16.msra.mxu0 %v3972_v38  ;;  %v3977_v28 = vld [vmem:[%s5260_s3 + $0x3d8] sm:$0xff]   ;;  %v4003_v38 = vld [vmem:[%s5260_s3 + $0x568] sm:$0xff]  }
 0x142   :  { %3614 = vmatprep.subr.bf16.mxu1 %v3949_v40  ;;  %3676 = vmatprep.subr.bf16.mxu0 %v3975_v41  ;;  %v4864_v40 = vpop.f32.mrf.mxu0  ;;  %v4182_v41 = vpop.eup %4181 }
 0x143   :  { %v260_v34 = vadd.f32 %v4864_v40, %v4477_v59  ;;  %v4043_v40 = vld [vmem:[%s5260_s3 + $0x658] sm:$0xff]  }
 0x144   :  { %v4184_v20 = vpop.eup %4183 }
 0x145   :  { %3615 = vmatpush3.bf16.msra.mxu1 %v3950_v45  ;;  %3677 = vmatpush3.bf16.msra.mxu0 %v3976_v46  ;;  %v4007_v45 = vld [vmem:[%s5260_s3 + $0x560] sm:$0xff]   ;;  %v248_v46 = vadd.f32 %v4755_v36, %v4477_v59  ;;  %v3985_v36 = vld [vmem:[%s5260_s3 + $0x3c8] sm:$0xff]  }
 0x146   :  { %3616 = vmatprep.subr.bf16.mxu1 %v3953_v30  ;;  %3678 = vmatprep.subr.bf16.mxu0 %v3979_v47  ;;  %v390_v30 = vadd.f32 1.0, %v4182_v41  ;;  %v4882_v47 = vpop.f32.mrf.mxu0  ;;  %v4009_v41 = vld [vmem:[%s5260_s3 + $0x4d8] sm:$0xff]  }
 0x147   :  { %v297_v51 = vsub.f32 0.0, %v248_v46  ;;  %v4036_v46 = vld [vmem:[%s5260_s3 + $0x628] sm:$0xff]  }
 0x148   :  { %4189 = vrcp.f32 %v390_v30  ;;  %v4039_v30 = vld [vmem:[%s5260_s3 + $0x660] sm:$0xff]  }
 0x149   :  { %3617 = vmatpush3.bf16.msra.mxu1 %v3954_v33  ;;  %3679 = vmatpush3.bf16.msra.mxu0 %v3980_v52  ;;  %v395_v33 = vadd.f32 1.0, %v4184_v20  ;;  %v252_v52 = vadd.f32 %v4773_v43, %v4475_v58  ;;  %v4015_v43 = vld [vmem:[%s5260_s3 + $0x550] sm:$0xff]  }
 0x14a   :  { %3618 = vmatprep.subr.bf16.mxu1 %v3957_v53  ;;  %3680 = vmatprep.subr.bf16.mxu0 %v3983_v39  ;;  %v265_v53 = vpop.f32.mrf.mxu0  ;;  %v3986_v39 = vld [vmem:[%s5260_s3 + $0x388] sm:$0xff]   ;;  %v4186_v0 = vpop.eup %4185  ;;  %v4013_v20 = vld [vmem:[%s5260_s3 + $0x4d0] sm:$0xff]  }
 0x14b   :  { %4191 = vrcp.f32 %v395_v33  ;;  %v298_v61 = vsub.f32 0.0, %v252_v52  ;;  %v301_v33 = vsub.f32 0.0, %v260_v34 }
 0x14c   :  { %4193 = vpow2.f32 %v342_v54 }
 0x14d   :  { %3619 = vmatpush3.bf16.msra.mxu1 %v3958_v57  ;;  %3681 = vmatpush3.bf16.msra.mxu0 %v3984_v60  ;;  %v352_v57 = vmul.f32 1.442695, %v297_v51  ;;  %v266_v60 = vadd.f32 %v265_v53, %v4477_v59  ;;  %v4017_v51 = vld [vmem:[%s5260_s3 + $0x4c8] sm:$0xff]   ;;  %v264_v53 = vadd.f32 %v4882_v47, %v4475_v58  ;;  %v4047_v47 = vld [vmem:[%s5260_s3 + $0x650] sm:$0xff]  }
 0x14e   :  { %3648 = vmatprep.subr.bf16.mxu1 %v3961_v62  ;;  %3682 = vmatprep.subr.bf16.mxu0 %v3987_v63  ;;  %v3990_v62 = vld [vmem:[%s5260_s3 + $0x380] sm:$0xff]   ;;  %v4016_v63 = vld [vmem:[%s5260_s3 + $0x510] sm:$0xff]  }
 0x14f   :  { %4195 = vpow2.f32 %v352_v57  ;;  %v360_v57 = vmul.f32 1.442695, %v301_v33  ;;  %v4053_v33 = vld [vmem:[%s5260_s3 + $0x5c0] sm:$0xff]  }
 0x150   :  { %1787 = vmatmul.mubr.bf16.vlgmr.msra.gmra.mxu1 %v444_v6  ;;  %v354_v6 = vmul.f32 1.442695, %v298_v61  ;;  %v4048_v61 = vld [vmem:[%s5260_s3 + $0x610] sm:$0xff]  }
 0x151   :  { %3649 = vmatpush3.bf16.msra.mxu1 %v3962_v4  ;;  %3683 = vmatpush3.bf16.msra.mxu0 %v3988_v5  ;;  %v4188_v4 = vpop.eup %4187  ;;  %v303_v5 = vsub.f32 0.0, %v266_v60  ;;  %v4022_v60 = vld [vmem:[%s5260_s3 + $0x480] sm:$0xff]  }
 0x152   :  { %3650 = vmatprep.subr.bf16.mxu1 %v3965_v7  ;;  %2058 = vmatprep.mubr.bf16.mxu1 %v449_v8  ;;  %v3994_v7 = vld [vmem:[%s5260_s3 + $0x4b8] sm:$0xff]   ;;  %v4020_v8 = vld [vmem:[%s5260_s3 + $0x508] sm:$0xff]   ;;  %v453_v11 = vpack.c.bf16 %v4188_v4, %v4188_v4  ;;  %4197 = vpow2.f32 %v354_v6 }
 0x153   :  { %3684 = vmatprep.subr.bf16.mxu0 %v3991_v9  ;;  %v448_v9 = vpack.c.bf16 %v4186_v0, %v4186_v0  ;;  %v4051_v0 = vld [vmem:[%s5260_s3 + $0x648] sm:$0xff]   ;;  %v4026_v4 = vld [vmem:[%s5260_s3 + $0x5b8] sm:$0xff]  }
 0x155   :  { %3651 = vmatpush3.bf16.msra.mxu1 %v3966_v13  ;;  %3685 = vmatpush3.bf16.msra.mxu0 %v3992_v14  ;;  %v4023_v13 = vld [vmem:[%s5260_s3 + $0x540] sm:$0xff]   ;;  %v364_v14 = vmul.f32 1.442695, %v303_v5  ;;  %v4052_v5 = vld [vmem:[%s5260_s3 + $0x608] sm:$0xff]  }
 0x156   :  { %3652 = vmatprep.subr.bf16.mxu1 %v3969_v16  ;;  %3714 = vmatprep.subr.bf16.mxu0 %v3995_v17  ;;  %v4190_v16 = vpop.eup %4189  ;;  %v3998_v17 = vld [vmem:[%s5260_s3 + $0x4b0] sm:$0xff]  }
 0x157   :  { %4199 = vpow2.f32 %v364_v14  ;;  %v454_v23 = vpack.c.bf16 %v4190_v16, %v4190_v16  ;;  %v4033_v14 = vld [vmem:[%s5260_s3 + $0x5e8] sm:$0xff]   ;;  %v4059_v16 = vld [vmem:[%s5260_s3 + $0x778] sm:$0xff]  }
 0x158   :  { %2195 = vmatmul.mubr.bf16.vlgmr.msra.gmra.mxu0 %v450_v19  ;;  %v4001_v19 = vld [vmem:[%s5260_s3 + $0x4e8] sm:$0xff]  }
 0x159   :  { %3653 = vmatpush3.bf16.msra.mxu1 %v3970_v2  ;;  %3715 = vmatpush3.bf16.msra.mxu0 %v3996_v22  ;;  %v4027_v2 = vld [vmem:[%s5260_s3 + $0x678] sm:$0xff]   ;;  %v4192_v22 = vpop.eup %4191 }
 0x15a   :  { %3654 = vmatprep.subr.bf16.mxu1 %v3973_v25  ;;  %3716 = vmatprep.subr.bf16.mxu0 %v3999_v27  ;;  %v4002_v25 = vld [vmem:[%s5260_s3 + $0x4a8] sm:$0xff]   ;;  %v4028_v27 = vld [vmem:[%s5260_s3 + $0x638] sm:$0xff]   ;;  %v4194_v29 = vpop.eup %4193 }
 0x15b   :  { %2466 = vmatprep.mubr.bf16.mxu0 %v455_v15  ;;  %v4005_v15 = vld [vmem:[%s5260_s3 + $0x4e0] sm:$0xff]  }
 0x15d   :  { %3655 = vmatpush3.bf16.msra.mxu1 %v3974_v35  ;;  %3717 = vmatpush3.bf16.msra.mxu0 %v4000_v37  ;;  %v4196_v35 = vpop.eup %4195  ;;  %v459_v37 = vpack.c.bf16 %v4192_v22, %v4192_v22 }
 0x15e   :  { %3656 = vmatprep.subr.bf16.mxu1 %v3977_v28  ;;  %3718 = vmatprep.subr.bf16.mxu0 %v4003_v38  ;;  %v388_v28 = vadd.f32 1.0, %v4194_v29  ;;  %v4032_v38 = vld [vmem:[%s5260_s3 + $0x630] sm:$0xff]  }
 0x160   :  { %4201 = vrcp.f32 %v388_v28  ;;  %v4041_v28 = vld [vmem:[%s5260_s3 + $0x5d8] sm:$0xff]  }
 0x161   :  { %3657 = vmatpush3.bf16.msra.mxu1 %v3978_v42  ;;  %3719 = vmatpush3.bf16.msra.mxu0 %v4004_v21  ;;  %v393_v42 = vadd.f32 1.0, %v4196_v35  ;;  %v4198_v21 = vpop.eup %4197  ;;  %v4038_v35 = vld [vmem:[%s5260_s3 + $0x5a0] sm:$0xff]  }
 0x162   :  { %3658 = vmatprep.subr.bf16.mxu1 %v3981_v44  ;;  %3720 = vmatprep.subr.bf16.mxu0 %v4007_v45  ;;  %v4010_v44 = vld [vmem:[%s5260_s3 + $0x498] sm:$0xff]   ;;  %v246_v45 = vadd.f32 %v4741_v26, %v4475_v58 }
 0x163   :  { %4203 = vrcp.f32 %v393_v42 }
 0x164   :  { %v4200_v26 = vpop.eup %4199 }
 0x165   :  { %3659 = vmatpush3.bf16.msra.mxu1 %v3982_v48  ;;  %3721 = vmatpush3.bf16.msra.mxu0 %v4008_v49  ;;  %v394_v48 = vadd.f32 1.0, %v4198_v21  ;;  %v296_v49 = vsub.f32 0.0, %v246_v45  ;;  %v399_v52 = vadd.f32 1.0, %v4200_v26  ;;  %v4068_v21 = vld [vmem:[%s5260_s3 + $0x728] sm:$0xff]   ;;  %v258_v45 = vadd.f32 %v4850_v31, %v4475_v58  ;;  %v4072_v31 = vld [vmem:[%s5260_s3 + $0x720] sm:$0xff]  }
 0x166   :  { %3660 = vmatprep.subr.bf16.mxu1 %v3985_v36  ;;  %3722 = vmatprep.subr.bf16.mxu0 %v4011_v50  ;;  %v4014_v36 = vld [vmem:[%s5260_s3 + $0x490] sm:$0xff]   ;;  %v4040_v50 = vld [vmem:[%s5260_s3 + $0x620] sm:$0xff]  }
 0x167   :  { %4205 = vrcp.f32 %v394_v48  ;;  %v350_v54 = vmul.f32 1.442695, %v296_v49  ;;  %v300_v26 = vsub.f32 0.0, %v258_v45  ;;  %v4049_v48 = vld [vmem:[%s5260_s3 + $0x5c8] sm:$0xff]   ;;  %v4075_v49 = vld [vmem:[%s5260_s3 + $0x758] sm:$0xff]  }
 0x168   :  { %4207 = vrcp.f32 %v399_v52  ;;  %v4079_v52 = vld [vmem:[%s5260_s3 + $0x750] sm:$0xff]   ;;  %v4090_v45 = vld [vmem:[%s5260_s3 + $0x7b8] sm:$0xff]  }
 0x169   :  { %3661 = vmatpush3.bf16.msra.mxu1 %v3986_v39  ;;  %3723 = vmatpush3.bf16.msra.mxu0 %v4012_v55  ;;  %v4018_v39 = vld [vmem:[%s5260_s3 + $0x488] sm:$0xff]   ;;  %v4044_v55 = vld [vmem:[%s5260_s3 + $0x618] sm:$0xff]   ;;  %4209 = vpow2.f32 %v350_v54  ;;  %v4080_v54 = vld [vmem:[%s5260_s3 + $0x710] sm:$0xff]  }
 0x16a   :  { %3662 = vmatprep.subr.bf16.mxu1 %v3989_v56  ;;  %3724 = vmatprep.subr.bf16.mxu0 %v4015_v43  ;;  %v4021_v56 = vld [vmem:[%s5260_s3 + $0x4c0] sm:$0xff]   ;;  %v302_v43 = vsub.f32 0.0, %v264_v53  ;;  %4211 = vpow2.f32 %v360_v57 }
 0x16b   :  { %v4054_v53 = vld [vmem:[%s5260_s3 + $0x580] sm:$0xff]  }
 0x16d   :  { %3663 = vmatpush3.bf16.msra.mxu1 %v3990_v62  ;;  %3725 = vmatpush3.bf16.msra.mxu0 %v4016_v63  ;;  %v4202_v62 = vpop.eup %4201  ;;  %v4025_v63 = vld [vmem:[%s5260_s3 + $0x5f8] sm:$0xff]  }
 0x16e   :  { %3692 = vmatprep.subr.bf16.mxu1 %v3993_v1  ;;  %3726 = vmatprep.subr.bf16.mxu0 %v4019_v3  ;;  %v362_v3 = vmul.f32 1.442695, %v302_v43  ;;  %v452_v6 = vpack.c.bf16 %v4202_v62, %v4202_v62  ;;  %v4084_v43 = vld [vmem:[%s5260_s3 + $0x708] sm:$0xff]  }
 0x170   :  { %2059 = vmatmul.mubr.bf16.vlgmr.msra.gmra.mxu1 %v448_v9  ;;  %v4204_v1 = vpop.eup %4203  ;;  %v4055_v9 = vld [vmem:[%s5260_s3 + $0x640] sm:$0xff]   ;;  %4213 = vpow2.f32 %v362_v3  ;;  %v4062_v3 = vld [vmem:[%s5260_s3 + $0x6b0] sm:$0xff]  }
 0x171   :  { %3693 = vmatpush3.bf16.msra.mxu1 %v3994_v7  ;;  %3727 = vmatpush3.bf16.msra.mxu0 %v4020_v8  ;;  %v4029_v7 = vld [vmem:[%s5260_s3 + $0x5f0] sm:$0xff]   ;;  %v457_v8 = vpack.c.bf16 %v4204_v1, %v4204_v1 }
 0x172   :  { %3694 = vmatprep.subr.bf16.mxu1 %v3997_v10  ;;  %2330 = vmatprep.mubr.bf16.mxu1 %v453_v11  ;;  %v4030_v11 = vld [vmem:[%s5260_s3 + $0x5b0] sm:$0xff]  }
 0x173   :  { %3728 = vmatprep.subr.bf16.mxu0 %v4023_v13  ;;  %v4056_v13 = vld [vmem:[%s5260_s3 + $0x600] sm:$0xff]  }
 0x174   :  { %v4206_v10 = vpop.eup %4205 }
 0x175   :  { %3695 = vmatpush3.bf16.msra.mxu1 %v3998_v17  ;;  %3729 = vmatpush3.bf16.msra.mxu0 %v4024_v18  ;;  %v4208_v17 = vpop.eup %4207  ;;  %v458_v18 = vpack.c.bf16 %v4206_v10, %v4206_v10  ;;  %v4066_v10 = vld [vmem:[%s5260_s3 + $0x6a8] sm:$0xff]  }
 0x176   :  { %3696 = vmatprep.subr.bf16.mxu1 %v4001_v19  ;;  %3758 = vmatprep.subr.bf16.mxu0 %v4027_v2  ;;  %v4034_v19 = vld [vmem:[%s5260_s3 + $0x5a8] sm:$0xff]   ;;  %v4060_v2 = vld [vmem:[%s5260_s3 + $0x738] sm:$0xff]   ;;  %v4210_v22 = vpop.eup %4209 }
 0x177   :  { %v4212_v29 = vpop.eup %4211 }
 0x178   :  { %2467 = vmatmul.mubr.bf16.vlgmr.msra.gmra.mxu0 %v454_v23  ;;  %v4037_v23 = vld [vmem:[%s5260_s3 + $0x5e0] sm:$0xff]  }
 0x179   :  { %3697 = vmatpush3.bf16.msra.mxu1 %v4002_v25  ;;  %3759 = vmatpush3.bf16.msra.mxu0 %v4028_v27  ;;  %v4063_v25 = vld [vmem:[%s5260_s3 + $0x770] sm:$0xff]   ;;  %v5061_v27 = vpop.f32.mrf.mxu0 }
 0x17a   :  { %3698 = vmatprep.subr.bf16.mxu1 %v4005_v15  ;;  %3760 = vmatprep.subr.bf16.mxu0 %v4031_v32  ;;  %v463_v15 = vpack.c.bf16 %v4208_v17, %v4208_v17  ;;  %v392_v32 = vadd.f32 1.0, %v4210_v22  ;;  %v4073_v22 = vld [vmem:[%s5260_s3 + $0x6d8] sm:$0xff]  }
 0x17b   :  { %2738 = vmatprep.mubr.bf16.mxu0 %v459_v37  ;;  %v4064_v37 = vld [vmem:[%s5260_s3 + $0x730] sm:$0xff]  }
 0x17c   :  { %4215 = vrcp.f32 %v392_v32  ;;  %v270_v32 = vadd.f32 %v5061_v27, %v4475_v58  ;;  %v4082_v58 = vld [vmem:[%s5260_s3 + $0x688] sm:$0xff]  }
 0x17d   :  { %3699 = vmatpush3.bf16.msra.mxu1 %v4006_v24  ;;  %3761 = vmatpush3.bf16.msra.mxu0 %v4032_v38  ;;  %v397_v24 = vadd.f32 1.0, %v4212_v29  ;;  %v4067_v38 = vld [vmem:[%s5260_s3 + $0x768] sm:$0xff]   ;;  %v4214_v42 = vpop.eup %4213 }
 0x17e   :  { %3700 = vmatprep.subr.bf16.mxu1 %v4009_v41  ;;  %3762 = vmatprep.subr.bf16.mxu0 %v4035_v12  ;;  %v271_v41 = vpop.f32.mrf.mxu0  ;;  %v4042_v12 = vld [vmem:[%s5260_s3 + $0x598] sm:$0xff]  }
 0x17f   :  { %4217 = vrcp.f32 %v397_v24  ;;  %v304_v24 = vsub.f32 0.0, %v270_v32 }
 0x181   :  { %3701 = vmatpush3.bf16.msra.mxu1 %v4010_v44  ;;  %3763 = vmatpush3.bf16.msra.mxu0 %v4036_v46  ;;  %v272_v44 = vadd.f32 %v271_v41, %v4477_v59  ;;  %v4045_v46 = vld [vmem:[%s5260_s3 + $0x5d0] sm:$0xff]   ;;  %v366_v27 = vmul.f32 1.442695, %v304_v24  ;;  %v4085_v41 = vld [vmem:[%s5260_s3 + $0x6c0] sm:$0xff]  }
 0x182   :  { %3702 = vmatprep.subr.bf16.mxu1 %v4013_v20  ;;  %3764 = vmatprep.subr.bf16.mxu0 %v4039_v30  ;;  %v4071_v20 = vld [vmem:[%s5260_s3 + $0x760] sm:$0xff]   ;;  %v398_v30 = vadd.f32 1.0, %v4214_v42  ;;  %v4046_v59 = vld [vmem:[%s5260_s3 + $0x590] sm:$0xff]  }
 0x183   :  { %v305_v34 = vsub.f32 0.0, %v272_v44  ;;  %v4086_v42 = vld [vmem:[%s5260_s3 + $0x680] sm:$0xff]  }
 0x184   :  { %4219 = vrcp.f32 %v398_v30  ;;  %v4091_v30 = vld [vmem:[%s5260_s3 + $0x7f0] sm:$0xff]  }
 0x185   :  { %3703 = vmatpush3.bf16.msra.mxu1 %v4014_v36  ;;  %3765 = vmatpush3.bf16.msra.mxu0 %v4040_v50  ;;  %v4050_v36 = vld [vmem:[%s5260_s3 + $0x588] sm:$0xff]   ;;  %v4076_v50 = vld [vmem:[%s5260_s3 + $0x718] sm:$0xff]  }
 0x186   :  { %3704 = vmatprep.subr.bf16.mxu1 %v4017_v51  ;;  %3766 = vmatprep.subr.bf16.mxu0 %v4043_v40  ;;  %v368_v51 = vmul.f32 1.442695, %v305_v34  ;;  %v358_v40 = vmul.f32 1.442695, %v300_v26  ;;  %v4093_v26 = vld [vmem:[%s5260_s3 + $0x7e8] sm:$0xff]  }
 0x188   :  { %4221 = vpow2.f32 %v368_v51 }
 0x189   :  { %3705 = vmatpush3.bf16.msra.mxu1 %v4018_v39  ;;  %3767 = vmatpush3.bf16.msra.mxu0 %v4044_v55  ;;  %v4216_v39 = vpop.eup %4215  ;;  %4223 = vpow2.f32 %v358_v40  ;;  %v4057_v55 = vld [vmem:[%s5260_s3 + $0x6f8] sm:$0xff]   ;;  %v4094_v40 = vld [vmem:[%s5260_s3 + $0x7a8] sm:$0xff]  }
 0x18a   :  { %3706 = vmatprep.subr.bf16.mxu1 %v4021_v56  ;;  %3768 = vmatprep.subr.bf16.mxu0 %v4047_v47  ;;  %v4083_v56 = vld [vmem:[%s5260_s3 + $0x748] sm:$0xff]   ;;  %v4058_v47 = vld [vmem:[%s5260_s3 + $0x6b8] sm:$0xff]  }
 0x18c   :  { %v4218_v57 = vpop.eup %4217 }
 0x18d   :  { %3707 = vmatpush3.bf16.msra.mxu1 %v4022_v60  ;;  %3769 = vmatpush3.bf16.msra.mxu0 %v4048_v61  ;;  %v456_v60 = vpack.c.bf16 %v4216_v39, %v4216_v39  ;;  %v4061_v61 = vld [vmem:[%s5260_s3 + $0x6f0] sm:$0xff]   ;;  %v461_v62 = vpack.c.bf16 %v4218_v57, %v4218_v57 }
 0x18e   :  { %3736 = vmatprep.subr.bf16.mxu1 %v4025_v63  ;;  %3770 = vmatprep.subr.bf16.mxu0 %v4051_v0  ;;  %v4087_v63 = vld [vmem:[%s5260_s3 + $0x740] sm:$0xff]  }
 0x190   :  { %2331 = vmatmul.mubr.bf16.vlgmr.msra.gmra.mxu1 %v452_v6  ;;  %v4065_v6 = vld [vmem:[%s5260_s3 + $0x6e8] sm:$0xff]  }
 0x191   :  { %3737 = vmatpush3.bf16.msra.mxu1 %v4026_v4  ;;  %3771 = vmatpush3.bf16.msra.mxu0 %v4052_v5  ;;  %v4220_v1 = vpop.eup %4219  ;;  %v4088_v4 = vld [vmem:[%s5260_s3 + $0x700] sm:$0xff]  }
 0x192   :  { %3738 = vmatprep.subr.bf16.mxu1 %v4029_v7  ;;  %2602 = vmatprep.mubr.bf16.mxu1 %v457_v8 }
 0x193   :  { %3772 = vmatprep.subr.bf16.mxu0 %v4055_v9  ;;  %v462_v9 = vpack.c.bf16 %v4220_v1, %v4220_v1  ;;  %v4100_v1 = vld [vmem:[%s5260_s3 + $0x790] sm:$0xff]  }
 0x195   :  { %3739 = vmatpush3.bf16.msra.mxu1 %v4030_v11  ;;  %3773 = vmatpush3.bf16.msra.mxu0 %v4056_v13  ;;  %v4222_v11 = vpop.eup %4221 }
 0x196   :  { %3740 = vmatprep.subr.bf16.mxu1 %v4033_v14  ;;  %3802 = vmatprep.subr.bf16.mxu0 %v4059_v16  ;;  %v4069_v14 = vld [vmem:[%s5260_s3 + $0x6e0] sm:$0xff]   ;;  %v4224_v16 = vpop.eup %4223 }
 0x198   :  { %2739 = vmatmul.mubr.bf16.vlgmr.msra.gmra.mxu0 %v458_v18  ;;  %v4070_v18 = vld [vmem:[%s5260_s3 + $0x6a0] sm:$0xff]  }
 0x199   :  { %3741 = vmatpush3.bf16.msra.mxu1 %v4034_v19  ;;  %3803 = vmatpush3.bf16.msra.mxu0 %v4060_v2  ;;  %v401_v19 = vadd.f32 1.0, %v4222_v11  ;;  %v396_v2 = vadd.f32 1.0, %v4224_v16 }
 0x19a   :  { %3742 = vmatprep.subr.bf16.mxu1 %v4037_v23  ;;  %3804 = vmatprep.subr.bf16.mxu0 %v4063_v25 }
 0x19b   :  { %3010 = vmatprep.mubr.bf16.mxu0 %v463_v15  ;;  %v4074_v15 = vld [vmem:[%s5260_s3 + $0x698] sm:$0xff]   ;;  %4225 = vrcp.f32 %v401_v19 }
 0x19c   :  { %4227 = vrcp.f32 %v396_v2 }
 0x19d   :  { %3743 = vmatpush3.bf16.msra.mxu1 %v4038_v35  ;;  %3805 = vmatpush3.bf16.msra.mxu0 %v4064_v37  ;;  %v4077_v35 = vld [vmem:[%s5260_s3 + $0x6d0] sm:$0xff]   ;;  %4229 = vpow2.f32 %v366_v27 }
 0x19e   :  { %3744 = vmatprep.subr.bf16.mxu1 %v4041_v28  ;;  %3806 = vmatprep.subr.bf16.mxu0 %v4067_v38  ;;  %v4078_v28 = vld [vmem:[%s5260_s3 + $0x690] sm:$0xff]   ;;  %v4081_v38 = vld [vmem:[%s5260_s3 + $0x6c8] sm:$0xff]  }
 0x1a1   :  { %3745 = vmatpush3.bf16.msra.mxu1 %v4042_v12  ;;  %3807 = vmatpush3.bf16.msra.mxu0 %v4068_v21  ;;  %v4089_v21 = vld [vmem:[%s5260_s3 + $0x7f8] sm:$0xff]  }
 0x1a2   :  { %3746 = vmatprep.subr.bf16.mxu1 %v4045_v46  ;;  %3808 = vmatprep.subr.bf16.mxu0 %v4071_v20 }
 0x1a5   :  { %3747 = vmatpush3.bf16.msra.mxu1 %v4046_v59  ;;  %3809 = vmatpush3.bf16.msra.mxu0 %v4072_v31  ;;  %v4092_v31 = vld [vmem:[%s5260_s3 + $0x7b0] sm:$0xff]  }
 0x1a6   :  { %3748 = vmatprep.subr.bf16.mxu1 %v4049_v48  ;;  %3810 = vmatprep.subr.bf16.mxu0 %v4075_v49 }
 0x1a8   :  { %v4226_v12 = vpop.eup %4225 }
 0x1a9   :  { %3749 = vmatpush3.bf16.msra.mxu1 %v4050_v36  ;;  %3811 = vmatpush3.bf16.msra.mxu0 %v4076_v50  ;;  %v4228_v44 = vpop.eup %4227  ;;  %v465_v46 = vpack.c.bf16 %v4226_v12, %v4226_v12 }
 0x1aa   :  { %3750 = vmatprep.subr.bf16.mxu1 %v4053_v33  ;;  %3812 = vmatprep.subr.bf16.mxu0 %v4079_v52  ;;  %v460_v20 = vpack.c.bf16 %v4228_v44, %v4228_v44 }
 0x1ad   :  { %3751 = vmatpush3.bf16.msra.mxu1 %v4054_v53  ;;  %3813 = vmatpush3.bf16.msra.mxu0 %v4080_v54  ;;  %v4095_v53 = vld [vmem:[%s5260_s3 + $0x7e0] sm:$0xff]   ;;  %v4230_v54 = vpop.eup %4229 }
 0x1ae   :  { %3780 = vmatprep.subr.bf16.mxu1 %v4057_v55  ;;  %3814 = vmatprep.subr.bf16.mxu0 %v4083_v56  ;;  %v4096_v56 = vld [vmem:[%s5260_s3 + $0x7a0] sm:$0xff]   ;;  %v400_v57 = vadd.f32 1.0, %v4230_v54 }
 0x1b0   :  { %2603 = vmatmul.mubr.bf16.vlgmr.msra.gmra.mxu1 %v456_v60  ;;  %v3510_v0 = vpop.f32.mrf.mxu1  ;;  %4231 = vrcp.f32 %v400_v57 }
 0x1b1   :  { %3781 = vmatpush3.bf16.msra.mxu1 %v4058_v47  ;;  %3815 = vmatpush3.bf16.msra.mxu0 %v4084_v43  ;;  %v4097_v47 = vld [vmem:[%s5260_s3 + $0x7d8] sm:$0xff]  }
 0x1b2   :  { %v3511_v5 = vpop.f32.mrf.mxu1  ;;  %3782 = vmatprep.subr.bf16.mxu1 %v4061_v61  ;;  %2874 = vmatprep.mubr.bf16.mxu1 %v461_v62  ;;  %v4098_v62 = vld [vmem:[%s5260_s3 + $0x798] sm:$0xff]  }
 0x1b3   :  { %v5147_v7 = vadd.f32 %v3511_v5, %v3510_v0  ;;  %3816 = vmatprep.subr.bf16.mxu0 %v4087_v63  ;;  %v4099_v63 = vld [vmem:[%s5260_s3 + $0x7d0] sm:$0xff]   ;;  %v4103_v5 = vld [vmem:[%s5260_s3 + $0x7c0] sm:$0xff]  }
 0x1b4   :  { %v3513_v8 = vpop.f32.mrf.mxu1 }
 0x1b5   :  { %3783 = vmatpush3.bf16.msra.mxu1 %v4062_v3  ;;  %3817 = vmatpush3.bf16.msra.mxu0 %v4088_v4  ;;  %v3156_v36 = vsel %vm26_vm2, %v5147_v7, 0.0  ;;  %v4101_v3 = vld [vmem:[%s5260_s3 + $0x7c8] sm:$0xff]  }
 0x1b6   :  { %v3514_v13 = vpop.f32.mrf.mxu1  ;;  %3784 = vmatprep.subr.bf16.mxu1 %v4065_v6  ;;  %v4102_v4 = vld [vmem:[%s5260_s3 + $0x788] sm:$0xff]   ;;  %v4104_v6 = vld [vmem:[%s5260_s3 + $0x780] sm:$0xff]  }
 0x1b8   :  { %v3554_v17 = vpop.f32.mrf.mxu0  ;;  %3011 = vmatmul.mubr.bf16.vlgmr.msra.gmra.mxu0 %v462_v9 }
 0x1b9   :  { %3785 = vmatpush3.bf16.msra.mxu1 %v4066_v10 }
 0x1ba   :  { %3786 = vmatprep.subr.bf16.mxu1 %v4069_v14  ;;  %v3555_v23 = vpop.f32.mrf.mxu0 }
 0x1bb   :  { %v3556_v25 = vadd.f32 %v3555_v23, %v3554_v17 }
 0x1bc   :  { %v3557_v29 = vpop.f32.mrf.mxu0 }
 0x1bd   :  { %3787 = vmatpush3.bf16.msra.mxu1 %v4070_v18  ;;  %v3159_v51 = vsel %vm26_vm2, %v3556_v25, 0.0  ;;  %v4232_v7 = vpop.eup %4231 }
 0x1be   :  { %3788 = vmatprep.subr.bf16.mxu1 %v4073_v22  ;;  %v3558_v37 = vpop.f32.mrf.mxu0  ;;  %v464_v8 = vpack.c.bf16 %v4232_v7, %v4232_v7 }
 0x1c1   :  { %3789 = vmatpush3.bf16.msra.mxu1 %v4074_v15 }
 0x1c2   :  { %3790 = vmatprep.subr.bf16.mxu1 %v4077_v35 }
 0x1c5   :  { %3791 = vmatpush3.bf16.msra.mxu1 %v4078_v28 }
 0x1c6   :  { %3792 = vmatprep.subr.bf16.mxu1 %v4081_v38 }
 0x1c9   :  { %3793 = vmatpush3.bf16.msra.mxu1 %v4082_v58 }
 0x1ca   :  { %3794 = vmatprep.subr.bf16.mxu1 %v4085_v41 }
 0x1cd   :  { %3795 = vmatpush3.bf16.msra.mxu1 %v4086_v42 }
 0x1ce   :  { %3824 = vmatprep.subr.bf16.mxu1 %v4089_v21 }
 0x1d0   :  { %v3532_v59 = vpop.f32.mrf.mxu1  ;;  %2875 = vmatmul.mubr.bf16.vlgmr.msra.gmra.mxu1 %v460_v20 }
 0x1d1   :  { %3825 = vmatpush3.bf16.msra.mxu1 %v4090_v45  ;;  %3146 = vmatprep.mubr.bf16.mxu1 %v465_v46 }
 0x1d2   :  { %v3533_v34 = vpop.f32.mrf.mxu1  ;;  %3826 = vmatprep.subr.bf16.mxu1 %v4091_v30 }
 0x1d3   :  { %v3534_v48 = vadd.f32 %v3533_v34, %v3532_v59 }
 0x1d4   :  { %v3535_v49 = vpop.f32.mrf.mxu1 }
 0x1d5   :  { %v3157_v50 = vsel %vm26_vm2, %v3534_v48, 0.0  ;;  %3827 = vmatpush3.bf16.msra.mxu1 %v4092_v31 }
 0x1d6   :  { %v3158_v33 = vadd.f32 %v3157_v50, %v3156_v36  ;;  %v3536_v52 = vpop.f32.mrf.mxu1  ;;  %3828 = vmatprep.subr.bf16.mxu1 %v4093_v26 }
 0x1d8   :  { %v3160_v39 = vadd.f32 %v3159_v51, %v3158_v33  ;;  %v3598_v55 = vpop.f32.mrf.mxu0 }
 0x1d9   :  { %3829 = vmatpush3.bf16.msra.mxu1 %v4094_v40 }
 0x1da   :  { %3830 = vmatprep.subr.bf16.mxu1 %v4095_v53  ;;  %v3599_v43 = vpop.f32.mrf.mxu0 }
 0x1db   :  { %v3600_v60 = vadd.f32 %v3599_v43, %v3598_v55 }
 0x1dc   :  { %v3601_v61 = vpop.f32.mrf.mxu0 }
 0x1dd   :  { %3831 = vmatpush3.bf16.msra.mxu1 %v4096_v56  ;;  %v3163_v16 = vsel %vm26_vm2, %v3600_v60, 0.0 }
 0x1de   :  { %3832 = vmatprep.subr.bf16.mxu1 %v4097_v47  ;;  %v3602_v0 = vpop.f32.mrf.mxu0 }
 0x1e1   :  { %3833 = vmatpush3.bf16.msra.mxu1 %v4098_v62 }
 0x1e2   :  { %3834 = vmatprep.subr.bf16.mxu1 %v4099_v63 }
 0x1e5   :  { %3835 = vmatpush3.bf16.msra.mxu1 %v4100_v1 }
 0x1e6   :  { %3836 = vmatprep.subr.bf16.mxu1 %v4101_v3 }
 0x1e9   :  { %3837 = vmatpush3.bf16.msra.mxu1 %v4102_v4 }
 0x1ea   :  { %3838 = vmatprep.subr.bf16.mxu1 %v4103_v5 }
 0x1ed   :  { %3839 = vmatpush3.bf16.msra.mxu1 %v4104_v6 }
 0x1f0   :  { %v3576_v9 = vpop.f32.mrf.mxu1  ;;  %3147 = vmatmul.mubr.bf16.vlgmr.msra.gmra.mxu1 %v464_v8 }
 0x1f2   :  { %v3577_v10 = vpop.f32.mrf.mxu1 }
 0x1f3   :  { %v3578_v11 = vadd.f32 %v3577_v10, %v3576_v9 }
 0x1f4   :  { %v3579_v13 = vpop.f32.mrf.mxu1 }
 0x1f5   :  { %v3161_v14 = vsel %vm26_vm2, %v3578_v11, 0.0 }
 0x1f6   :  { %v3162_v17 = vadd.f32 %v3161_v14, %v3160_v39  ;;  %v3580_v18 = vpop.f32.mrf.mxu1 }
 0x1f8   :  { %v3164_v19 = vadd.f32 %v3163_v16, %v3162_v17  ;;  %v3642_v2 = vpop.f32.mrf.mxu0 }
 0x1fa   :  { %v3643_v22 = vpop.f32.mrf.mxu0 }
 0x1fb   :  { %v3644_v23 = vadd.f32 %v3643_v22, %v3642_v2 }
 0x1fc   :  { %v3645_v25 = vpop.f32.mrf.mxu0 }
 0x1fd   :  { %v3167_v24 = vsel %vm26_vm2, %v3644_v23, 0.0 }
 0x1fe   :  { %v3646_v29 = vpop.f32.mrf.mxu0 }
 0x210   :  { %v3620_v15 = vpop.f32.mrf.mxu1 }
 0x212   :  { %v3621_v32 = vpop.f32.mrf.mxu1 }
 0x213   :  { %v3622_v35 = vadd.f32 %v3621_v32, %v3620_v15 }
 0x214   :  { %v3623_v37 = vpop.f32.mrf.mxu1 }
 0x215   :  { %v3165_v28 = vsel %vm26_vm2, %v3622_v35, 0.0 }
 0x216   :  { %v3166_v38 = vadd.f32 %v3165_v28, %v3164_v19  ;;  %v3624_v58 = vpop.f32.mrf.mxu1 }
 0x218   :  { %v3168_v27 = vadd.f32 %v3167_v24, %v3166_v38  ;;  %v3686_v41 = vpop.f32.mrf.mxu0  ;;  %v3154_v24 = vld [vmem:[#allocation2] sm:$0xff] }
 0x21a   :  { %v3687_v42 = vpop.f32.mrf.mxu0 }
 0x21b   :  { %v3688_v12 = vadd.f32 %v3687_v42, %v3686_v41  ;;  %v3493_v42 = vld [vmem:[%s5261_s4] ss:$0 sm:$0xff] }
 0x21c   :  { %v3689_v21 = vpop.f32.mrf.mxu0 }
 0x21d   :  { %v3171_v31 = vsel %vm26_vm2, %v3688_v12, 0.0 }
 0x21e   :  { %v3690_v44 = vpop.f32.mrf.mxu0 }
 0x230   :  { %v3664_v45 = vpop.f32.mrf.mxu1 }
 0x232   :  { %v3665_v46 = vpop.f32.mrf.mxu1 }
 0x233   :  { %v3666_v20 = vadd.f32 %v3665_v46, %v3664_v45 }
 0x234   :  { %v3667_v30 = vpop.f32.mrf.mxu1 }
 0x235   :  { %v3169_v59 = vsel %vm26_vm2, %v3666_v20, 0.0 }
 0x236   :  { %v3170_v34 = vadd.f32 %v3169_v59, %v3168_v27  ;;  %v3668_v26 = vpop.f32.mrf.mxu1 }
 0x238   :  { %v3172_v48 = vadd.f32 %v3171_v31, %v3170_v34  ;;  %v3730_v49 = vpop.f32.mrf.mxu0 }
 0x23a   :  { %v3731_v36 = vpop.f32.mrf.mxu0 }
 0x23b   :  { %v3732_v50 = vadd.f32 %v3731_v36, %v3730_v49 }
 0x23c   :  { %v3733_v51 = vpop.f32.mrf.mxu0 }
 0x23d   :  { %v3175_v55 = vsel %vm26_vm2, %v3732_v50, 0.0 }
 0x23e   :  { %v3734_v40 = vpop.f32.mrf.mxu0 }
 0x250   :  { %v3708_v33 = vpop.f32.mrf.mxu1 }
 0x252   :  { %v3709_v52 = vpop.f32.mrf.mxu1 }
 0x253   :  { %v3710_v53 = vadd.f32 %v3709_v52, %v3708_v33 }
 0x254   :  { %v3711_v54 = vpop.f32.mrf.mxu1 }
 0x255   :  { %v3173_v39 = vsel %vm26_vm2, %v3710_v53, 0.0 }
 0x256   :  { %v3174_v56 = vadd.f32 %v3173_v39, %v3172_v48  ;;  %v3712_v57 = vpop.f32.mrf.mxu1 }
 0x258   :  { %v3176_v47 = vadd.f32 %v3175_v55, %v3174_v56  ;;  %v3774_v43 = vpop.f32.mrf.mxu0 }
 0x25a   :  { %v3775_v60 = vpop.f32.mrf.mxu0 }
 0x25b   :  { %v3776_v61 = vadd.f32 %v3775_v60, %v3774_v43 }
 0x25c   :  { %v3777_v62 = vpop.f32.mrf.mxu0 }
 0x25d   :  { %v3179_v6 = vsel %vm26_vm2, %v3776_v61, 0.0 }
 0x25e   :  { %v3778_v63 = vpop.f32.mrf.mxu0 }
 0x270   :  { %v3752_v0 = vpop.f32.mrf.mxu1 }
 0x272   :  { %v3753_v1 = vpop.f32.mrf.mxu1 }
 0x273   :  { %v3754_v3 = vadd.f32 %v3753_v1, %v3752_v0 }
 0x274   :  { %v3755_v4 = vpop.f32.mrf.mxu1 }
 0x275   :  { %v3177_v5 = vsel %vm26_vm2, %v3754_v3, 0.0 }
 0x276   :  { %v3178_v7 = vadd.f32 %v3177_v5, %v3176_v47  ;;  %v3756_v8 = vpop.f32.mrf.mxu1 }
 0x278   :  { %v3180_v9 = vadd.f32 %v3179_v6, %v3178_v7  ;;  %v3818_v10 = vpop.f32.mrf.mxu0 }
 0x27a   :  { %v3819_v11 = vpop.f32.mrf.mxu0 }
 0x27b   :  { %v3820_v23 = vadd.f32 %v3819_v11, %v3818_v10 }
 0x27c   :  { %v3821_v13 = vpop.f32.mrf.mxu0 }
 0x27d   :  { %v3183_v15 = vsel %vm26_vm2, %v3820_v23, 0.0 }
 0x27e   :  { %v3822_v14 = vpop.f32.mrf.mxu0 }
 0x290   :  { %v3796_v16 = vpop.f32.mrf.mxu1 }
 0x292   :  { %v3797_v17 = vpop.f32.mrf.mxu1 }
 0x293   :  { %v3798_v2 = vadd.f32 %v3797_v17, %v3796_v16 }
 0x294   :  { %v3799_v18 = vpop.f32.mrf.mxu1 }
 0x295   :  { %v3181_v22 = vsel %vm26_vm2, %v3798_v2, 0.0 }
 0x296   :  { %v3800_v19 = vpop.f32.mrf.mxu1  ;;  %v3182_v25 = vadd.f32 %v3181_v22, %v3180_v9 }
 0x298   :  { %v3184_v37 = vadd.f32 %v3183_v15, %v3182_v25 }
 0x2b0   :  { %v3840_v29 = vpop.f32.mrf.mxu1 }
 0x2b2   :  { %v3841_v32 = vpop.f32.mrf.mxu1 }
 0x2b3   :  { %v3842_v35 = vadd.f32 %v3841_v32, %v3840_v29 }
 0x2b4   :  { %v3843_v28 = vpop.f32.mrf.mxu1 }
 0x2b5   :  { %v3185_v38 = vsel %vm26_vm2, %v3842_v35, 0.0 }
 0x2b6   :  { %v3186_v58 = vadd.f32 %v3185_v38, %v3184_v37  ;;  %v3844_v27 = vpop.f32.mrf.mxu1 }
 0x2b8   :  { %v3187_v41 = vadd.f32 %v3186_v58, %v3154_v24 }
 0x2ba   :  { %3188 = vst.msk [vmem:[#allocation2] sm:$0xff] %vm26_vm2, %v3187_v41 }
 0x2c1   :  { %v3192_v12 = vld [vmem:[#allocation2] sm:$0xff] }
 0x2c2   :  { %v3200_v21 = vadd.f32 %v3493_v42, %v3192_v12 }
 0x2c4   :  { %vm3201_vm3 = vcmp.ge.f32.partialorder %v3200_v21, 0.0  ;;  %v3202_v44 = vmul.f32 2.0, %v3200_v21 }
 0x2c6   :  { %v3203_v45 = vsel %vm3201_vm3, %v3200_v21, %v3202_v44 }
 0x2c7   :  { %3204 = vst.msk [vmem:[#allocation3] sm:$0xff] %vm26_vm2, %v3203_v45 }
 0x2c8   :  { %4244 = shalt.err (!%p4241_p4)
}
 0x2c9   :  { %3214 = dma.vmem_to_hbm [thread:$0]  %s3212_s15, 128, %s5262_s5, [#allocation4]  }
 0x2ca   :  { %4253 = dma.done.wait [#allocation4], 128  }
 0x2cb   :  { %4254 = vsyncadd [#allocation4], 4294967168 }
 0x2cc   :  { %3218 = vsyncpa [#allocation4], 1 }

</bundles_post_ra>
